<compile_context>
chip_gen: v5e
topology: v5e:2x2
jax: 0.10.0
libtpu: 0.0.40
codegen_flags: <defaults>
</compile_context>

<pallas_src>
import jax
import jax.numpy as jnp
from jax.experimental import pallas as pl
from jax.experimental.pallas import tpu as pltpu


def _round_up(x, m):
    return ((x + m - 1) // m) * m


def _make_standard_unit_kernel(H, W, Cin, Cout, Kp1, Kp2):
    Hp, Wp = H + 2, W + 2
    HWp = H * Wp                    # extended-width flattened conv-output extent
    L = Hp * Wp                     # flattened padded-image extent
    OFF = 2                         # front spare lanes: "value at p-2" becomes a plain offset read
    XPW = OFF + L + 2               # +2 back spares: the (ky=2,kx=2) tap reads up to logical L+1
    c_max = max(Cin, Cout)
    Kpm = max(Kp1, Kp2)
    KZ = 9 * min(Cin, Cout)         # col rows >= KZ are only ever multiplied by zero weights

    def row_reflect(xp_ref, C):
        # padded row 0 <- padded row 2 ; padded row Hp-1 <- padded row Hp-3 (contiguous copies)
        xp_ref[0:C, OFF:OFF + Wp] = xp_ref[0:C, OFF + 2 * Wp:OFF + 3 * Wp]
        xp_ref[0:C, OFF + (Hp - 1) * Wp:OFF + Hp * Wp] = (
            xp_ref[0:C, OFF + (Hp - 3) * Wp:OFF + (Hp - 2) * Wp])

    def col_reflect(xp_ref, sel_ref, C):
        # left border (p % Wp == 0)     <- value at p + 2
        # right border (p % Wp == Wp-1) <- value at p - 2
        body = xp_ref[0:C, OFF:OFF + L]
        left_src = xp_ref[0:C, OFF + 2:OFF + 2 + L]
        right_src = xp_ref[0:C, OFF - 2:OFF - 2 + L]
        sel = jnp.broadcast_to(sel_ref[...], (C, L))
        fixed = jnp.where(sel == 1, left_src, jnp.where(sel == 2, right_src, body))
        xp_ref[0:C, OFF:OFF + L] = fixed

    def conv_stage(xp_ref, col_ref, w, b, C, Kp):
        # im2col: 9 lane-offset row-block copies, each lane-dense over HWp (no reshape/retile)
        for ky in range(3):
            for kx in range(3):
                t = ky * 3 + kx
                s = OFF + ky * Wp + kx
                col_ref[t * C:(t + 1) * C, :] = xp_ref[0:C, s:s + HWp]
        acc = jnp.dot(w, col_ref[0:Kp, :], preferred_element_type=jnp.float32)
        return jnp.maximum(acc + b, 0.0)          # (Cout, HWp) f32

    def kernel(x_ref, w1_ref, b1_ref, w2_ref, b2_ref, sel_ref, o_ref, xp_ref, col_ref):
        # Keep the never-otherwise-written scratch regions finite (uninitialized VMEM could hold
        # NaN bit patterns). Done every step so it stays correct when the "parallel" grid axis is
        # split across TensorCores (each core has its own scratch); cost is negligible.
        if KZ < Kpm:
            col_ref[KZ:Kpm, :] = jnp.zeros((Kpm - KZ, HWp), col_ref.dtype)
        xp_ref[:, 0:OFF] = jnp.zeros((c_max, OFF), xp_ref.dtype)
        xp_ref[:, XPW - 2:XPW] = jnp.zeros((c_max, 2), xp_ref.dtype)

        # ---- stage 1: input rows arrive already width-reflected (wrapper); fix top/bottom rows
        xp_ref[0:Cin, OFF + Wp:OFF + Wp + HWp] = x_ref[0].astype(xp_ref.dtype)
        row_reflect(xp_ref, Cin)
        y1 = conv_stage(xp_ref, col_ref, w1_ref[...], b1_ref[...], Cin, Kp1)

        # ---- stage 2: activation never leaves VMEM. The matmul epilogue writes the padded
        # scratch interior directly; its 2 garbage columns per row land exactly in the border
        # cells that the reflection fix-up overwrites next.
        xp_ref[0:Cout, OFF + Wp + 1:OFF + Wp + 1 + HWp] = y1.astype(xp_ref.dtype)
        col_reflect(xp_ref, sel_ref, Cout)
        row_reflect(xp_ref, Cout)
        y2 = conv_stage(xp_ref, col_ref, w2_ref[...], b2_ref[...], Cout, Kp2)

        # lane-dense store: (Cout, H*(W+2)); wrapper strips the 2 garbage columns per row.
        o_ref[0] = y2.astype(o_ref.dtype)

    return kernel


def _vmem_limit_bytes(working_set_bytes):
    try:
        phys = int(pltpu.get_tpu_info().vmem_capacity_bytes)
    except Exception:
        phys = 64 * 1024 * 1024          # v7x per-TensorCore capacity (smallest current gen)
    want = max(2 * working_set_bytes + (8 << 20), 32 << 20)
    return int(min(want, (phys * 3) // 4))   # leave headroom for compiler-managed buffers


@jax.jit
def standard_unit(x_nchw, w1, b1, w2, b2):
    """Fused [reflect-pad(1) -> conv3x3 -> ReLU] x2 (StandardUnit forward, eval mode).

    x_nchw: (N, Cin, H, W); w1/w2: PyTorch Conv2d layout (Cout, Cin|Cout, 3, 3); b1/b2: (Cout,).
    """
    N, Cin, H, W = x_nchw.shape
    Cout = w1.shape[0]
    Hp, Wp = H + 2, W + 2
    HWp = H * Wp
    L = Hp * Wp
    Kp1 = _round_up(9 * Cin, 128)
    Kp2 = _round_up(9 * Cout, 128)
    c_max = max(Cin, Cout)
    Kpm = max(Kp1, Kp2)
    XPW = 2 + L + 2

    kernel = _make_standard_unit_kernel(H, W, Cin, Cout, Kp1, Kp2)

    def prep_w(w, kp):
        cin = w.shape[1]
        # im2col column index = (ky*3 + kx)*Cin + c ; zero-pad K to a multiple of 128 (MXU aligned)
        m = jnp.transpose(w, (0, 2, 3, 1)).reshape(Cout, 9 * cin)
        if kp > 9 * cin:
            m = jnp.pad(m, ((0, 0), (0, kp - 9 * cin)))
        return m.astype(jnp.bfloat16)

    w1_mat = prep_w(w1, Kp1)
    w2_mat = prep_w(w2, Kp2)
    b1_col = b1.reshape(Cout, 1).astype(jnp.float32)
    b2_col = b2.reshape(Cout, 1).astype(jnp.float32)

    # selector over the flattened padded image: 1 = left border column, 2 = right border column
    p = jnp.arange(L, dtype=jnp.int32) % Wp
    sel = jnp.where(p == 0, 1, jnp.where(p == Wp - 1, 2, 0)).reshape(1, L).astype(jnp.int32)

    # width-only reflection pad + bf16 cast in XLA (one cheap pass); row reflection is in-kernel.
    x_ext = jnp.pad(x_nchw, ((0, 0), (0, 0), (0, 0), (1, 1)), mode="reflect")
    x_flat = x_ext.reshape(N, Cin, HWp).astype(jnp.bfloat16)

    itemsize_out = jnp.dtype(x_nchw.dtype).itemsize
    working_set = (
        2 * (Cin * HWp * 2) + 2 * (Cout * HWp * itemsize_out)
        + 2 * (Cout * (Kp1 + Kp2) * 2 + 2 * Cout * 4 + L * 4)
        + c_max * XPW * 2 + Kpm * HWp * 2)

    out_ext = pl.pallas_call(
        kernel,
        out_shape=jax.ShapeDtypeStruct((N, Cout, HWp), x_nchw.dtype),
        grid_spec=pltpu.PrefetchScalarGridSpec(
            num_scalar_prefetch=0,
            grid=(N,),
            in_specs=[
                pl.BlockSpec((1, Cin, HWp), lambda n: (n, 0, 0)),
                pl.BlockSpec((Cout, Kp1), lambda n: (0, 0)),
                pl.BlockSpec((Cout, 1), lambda n: (0, 0)),
                pl.BlockSpec((Cout, Kp2), lambda n: (0, 0)),
                pl.BlockSpec((Cout, 1), lambda n: (0, 0)),
                pl.BlockSpec((1, L), lambda n: (0, 0)),
            ],
            out_specs=pl.BlockSpec((1, Cout, HWp), lambda n: (n, 0, 0)),
            scratch_shapes=[
                pltpu.VMEM((c_max, XPW), jnp.bfloat16),   # flat padded image, reused by both stages
                pltpu.VMEM((Kpm, HWp), jnp.bfloat16),     # im2col buffer, K padded to 128
            ],
        ),
        compiler_params=pltpu.CompilerParams(
            dimension_semantics=("parallel",),
            vmem_limit_bytes=_vmem_limit_bytes(working_set),
        ),
        # TODO(synk): for real UNet++ sizes (H*W >= 16K, C >= 64) add a row-tiled grid axis with a
        # 2-row halo (also "parallel" so both v7x TensorCores get work at batch 1) so the padded /
        # im2col scratches stay bounded; at the current test scale one image per step fits easily.
        # TODO(synk): Cout < 128 leaves most MXU result rows masked; N-padding was skipped on
        # purpose to keep the f32 accumulator small at these channel counts.
    )(x_flat, w1_mat, b1_col, w2_mat, b2_col, sel)

    # strip the 2 garbage columns per row (extended-width trick) with one cheap XLA slice
    return out_ext.reshape(N, Cout, H, Wp)[:, :, :, :W]


def init_conv_params(key, cin, cout, k=3, dtype=jnp.float32):
    """PyTorch-layout Conv2d params: weight (Cout, Cin, k, k) kaiming-normal(fan_in, gain=sqrt(2)),
    bias uniform(-1/sqrt(fan_in), 1/sqrt(fan_in)) as in nn.Conv2d defaults."""
    kw_, kb_ = jax.random.split(key)
    fan_in = cin * k * k
    std = (2.0 / fan_in) ** 0.5
    w = std * jax.random.normal(kw_, (cout, cin, k, k), dtype=dtype)
    bound = 1.0 / (fan_in ** 0.5)
    b = jax.random.uniform(kb_, (cout,), dtype=dtype, minval=-bound, maxval=bound)
    return w, b


def ref_standard_unit(x, w1, b1, w2, b2):
    """Pure-JAX reference (reflect pad + conv + ReLU, twice) with PyTorch OIHW weights."""
    def conv(x, w, b):
        xp = jnp.pad(x, ((0, 0), (0, 0), (1, 1), (1, 1)), mode="reflect")
        y = jax.lax.conv_general_dilated(
            xp, w, window_strides=(1, 1), padding="VALID",
            dimension_numbers=("NCHW", "OIHW", "NCHW"))
        return jax.nn.relu(y + b.reshape(1, -1, 1, 1))
    return conv(conv(x, w1, b1), w2, b2)


if __name__ == "__main__":
    key = jax.random.PRNGKey(0)
    kx_, k1, k2 = jax.random.split(key, 3)

    N, Cin, Cout, H, W = 2, 4, 8, 16, 16
    x = jax.random.normal(kx_, (N, Cin, H, W), dtype=jnp.float32)

    w1, b1 = init_conv_params(k1, Cin, Cout)
    w2, b2 = init_conv_params(k2, Cout, Cout)

    out = standard_unit(x, w1, b1, w2, b2)
    jax.block_until_ready(out)
    assert out.shape == (N, Cout, H, W)

    # loose tolerance: bf16 MXU operands (f32 accumulation, bias and ReLU stay f32)
    ref = ref_standard_unit(x, w1, b1, w2, b2)
    err = float(jnp.max(jnp.abs(out - ref)))
    assert jnp.allclose(out, ref, atol=0.1, rtol=0.1), err
    print("KERNEL_OK")
    # TODO(synk): drop_rate is declared in StandardUnit.__init__ but unused in forward(); omitted.
</pallas_src>

<mosaic_0001>
module attributes {stable_mosaic.version = 11 : i64} {
  func.func @kernel(%arg0: i32, %arg1: memref<1x4x288xbf16, #tpu.memory_space<vmem>>, %arg2: memref<8x128xbf16, #tpu.memory_space<vmem>>, %arg3: memref<8x1xf32, #tpu.memory_space<vmem>>, %arg4: memref<8x128xbf16, #tpu.memory_space<vmem>>, %arg5: memref<8x1xf32, #tpu.memory_space<vmem>>, %arg6: memref<1x324xi32, #tpu.memory_space<vmem>>, %arg7: memref<1x8x288xf32, #tpu.memory_space<vmem>>, %arg8: memref<8x328xbf16, #tpu.memory_space<vmem>>, %arg9: memref<128x288xbf16, #tpu.memory_space<vmem>>) attributes {dimension_semantics = [#tpu.dimension_semantics<parallel>], iteration_bounds = array<i64: 2>, scalar_prefetch = 0 : i64, scratch_operands = 2 : i64, tpu.core_type = #tpu.core_type<tc>, window_params = [{transform_indices = @transform_0, window_bounds = array<i64: 1, 4, 288>}, {pipeline_mode = #tpu.pipeline_mode<synchronous>, transform_indices = @transform_1, window_bounds = array<i64: 8, 128>}, {pipeline_mode = #tpu.pipeline_mode<synchronous>, transform_indices = @transform_2, window_bounds = array<i64: 8, 1>}, {pipeline_mode = #tpu.pipeline_mode<synchronous>, transform_indices = @transform_3, window_bounds = array<i64: 8, 128>}, {pipeline_mode = #tpu.pipeline_mode<synchronous>, transform_indices = @transform_4, window_bounds = array<i64: 8, 1>}, {pipeline_mode = #tpu.pipeline_mode<synchronous>, transform_indices = @transform_5, window_bounds = array<i64: 1, 324>}, {transform_indices = @transform_6, window_bounds = array<i64: 1, 8, 288>}]} {
    %cst = arith.constant 0.000000e+00 : bf16
    %0 = vector.broadcast %cst : bf16 to vector<92x288xbf16>
    %c36 = arith.constant 36 : index
    %c0 = arith.constant 0 : index
    %1 = vector.load %arg9[%c36, %c0] : memref<128x288xbf16, #tpu.memory_space<vmem>>, vector<92x288xbf16>
    tpu.vector_store %arg9[%c36, %c0], %0 {strides = array<i32>} : memref<128x288xbf16, #tpu.memory_space<vmem>>, vector<92x288xbf16>,
    %cst_0 = arith.constant 0.000000e+00 : bf16
    %2 = vector.broadcast %cst_0 : bf16 to vector<8x2xbf16>
    %c0_1 = arith.constant 0 : index
    %c0_2 = arith.constant 0 : index
    %3 = vector.load %arg8[%c0_1, %c0_2] : memref<8x328xbf16, #tpu.memory_space<vmem>>, vector<8x2xbf16>
    tpu.vector_store %arg8[%c0_1, %c0_2], %2 {strides = array<i32>} : memref<8x328xbf16, #tpu.memory_space<vmem>>, vector<8x2xbf16>,
    %cst_3 = arith.constant 0.000000e+00 : bf16
    %4 = vector.broadcast %cst_3 : bf16 to vector<8x2xbf16>
    %c0_4 = arith.constant 0 : index
    %c326 = arith.constant 326 : index
    %5 = vector.load %arg8[%c0_4, %c326] : memref<8x328xbf16, #tpu.memory_space<vmem>>, vector<8x2xbf16>
    tpu.vector_store %arg8[%c0_4, %c326], %4 {strides = array<i32>} : memref<8x328xbf16, #tpu.memory_space<vmem>>, vector<8x2xbf16>,
    %c0_5 = arith.constant 0 : index
    %c0_6 = arith.constant 0 : index
    %c0_7 = arith.constant 0 : index
    %6 = vector.load %arg1[%c0_5, %c0_6, %c0_7] : memref<1x4x288xbf16, #tpu.memory_space<vmem>>, vector<1x4x288xbf16>
    %7 = vector.shape_cast %6 : vector<1x4x288xbf16> to vector<4x288xbf16>
    %c0_8 = arith.constant 0 : index
    %c20 = arith.constant 20 : index
    %8 = vector.load %arg8[%c0_8, %c20] : memref<8x328xbf16, #tpu.memory_space<vmem>>, vector<4x288xbf16>
    tpu.vector_store %arg8[%c0_8, %c20], %7 {strides = array<i32>} : memref<8x328xbf16, #tpu.memory_space<vmem>>, vector<4x288xbf16>,
    %c0_9 = arith.constant 0 : index
    %c38 = arith.constant 38 : index
    %9 = vector.load %arg8[%c0_9, %c38] : memref<8x328xbf16, #tpu.memory_space<vmem>>, vector<4x18xbf16>
    %c0_10 = arith.constant 0 : index
    %c2 = arith.constant 2 : index
    %10 = vector.load %arg8[%c0_10, %c2] : memref<8x328xbf16, #tpu.memory_space<vmem>>, vector<4x18xbf16>
    tpu.vector_store %arg8[%c0_10, %c2], %9 {strides = array<i32>} : memref<8x328xbf16, #tpu.memory_space<vmem>>, vector<4x18xbf16>,
    %c0_11 = arith.constant 0 : index
    %c272 = arith.constant 272 : index
    %11 = vector.load %arg8[%c0_11, %c272] : memref<8x328xbf16, #tpu.memory_space<vmem>>, vector<4x18xbf16>
    %c0_12 = arith.constant 0 : index
    %c308 = arith.constant 308 : index
    %12 = vector.load %arg8[%c0_12, %c308] : memref<8x328xbf16, #tpu.memory_space<vmem>>, vector<4x18xbf16>
    tpu.vector_store %arg8[%c0_12, %c308], %11 {strides = array<i32>} : memref<8x328xbf16, #tpu.memory_space<vmem>>, vector<4x18xbf16>,
    %c0_13 = arith.constant 0 : index
    %c0_14 = arith.constant 0 : index
    %13 = vector.load %arg2[%c0_13, %c0_14] : memref<8x128xbf16, #tpu.memory_space<vmem>>, vector<8x128xbf16>
    %c0_15 = arith.constant 0 : index
    %c0_16 = arith.constant 0 : index
    %14 = vector.load %arg3[%c0_15, %c0_16] : memref<8x1xf32, #tpu.memory_space<vmem>>, vector<8x1xf32>
    %c0_17 = arith.constant 0 : index
    %c2_18 = arith.constant 2 : index
    %15 = vector.load %arg8[%c0_17, %c2_18] : memref<8x328xbf16, #tpu.memory_space<vmem>>, vector<4x288xbf16>
    %c0_19 = arith.constant 0 : index
    %c0_20 = arith.constant 0 : index
    %16 = vector.load %arg9[%c0_19, %c0_20] : memref<128x288xbf16, #tpu.memory_space<vmem>>, vector<4x288xbf16>
    tpu.vector_store %arg9[%c0_19, %c0_20], %15 {strides = array<i32>} : memref<128x288xbf16, #tpu.memory_space<vmem>>, vector<4x288xbf16>,
    %c0_21 = arith.constant 0 : index
    %c3 = arith.constant 3 : index
    %17 = vector.load %arg8[%c0_21, %c3] : memref<8x328xbf16, #tpu.memory_space<vmem>>, vector<4x288xbf16>
    %c4 = arith.constant 4 : index
    %c0_22 = arith.constant 0 : index
    %18 = vector.load %arg9[%c4, %c0_22] : memref<128x288xbf16, #tpu.memory_space<vmem>>, vector<4x288xbf16>
    tpu.vector_store %arg9[%c4, %c0_22], %17 {strides = array<i32>} : memref<128x288xbf16, #tpu.memory_space<vmem>>, vector<4x288xbf16>,
    %c0_23 = arith.constant 0 : index
    %c4_24 = arith.constant 4 : index
    %19 = vector.load %arg8[%c0_23, %c4_24] : memref<8x328xbf16, #tpu.memory_space<vmem>>, vector<4x288xbf16>
    %c8 = arith.constant 8 : index
    %c0_25 = arith.constant 0 : index
    %20 = vector.load %arg9[%c8, %c0_25] : memref<128x288xbf16, #tpu.memory_space<vmem>>, vector<4x288xbf16>
    tpu.vector_store %arg9[%c8, %c0_25], %19 {strides = array<i32>} : memref<128x288xbf16, #tpu.memory_space<vmem>>, vector<4x288xbf16>,
    %c0_26 = arith.constant 0 : index
    %c20_27 = arith.constant 20 : index
    %21 = vector.load %arg8[%c0_26, %c20_27] : memref<8x328xbf16, #tpu.memory_space<vmem>>, vector<4x288xbf16>
    %c12 = arith.constant 12 : index
    %c0_28 = arith.constant 0 : index
    %22 = vector.load %arg9[%c12, %c0_28] : memref<128x288xbf16, #tpu.memory_space<vmem>>, vector<4x288xbf16>
    tpu.vector_store %arg9[%c12, %c0_28], %21 {strides = array<i32>} : memref<128x288xbf16, #tpu.memory_space<vmem>>, vector<4x288xbf16>,
    %c0_29 = arith.constant 0 : index
    %c21 = arith.constant 21 : index
    %23 = vector.load %arg8[%c0_29, %c21] : memref<8x328xbf16, #tpu.memory_space<vmem>>, vector<4x288xbf16>
    %c16 = arith.constant 16 : index
    %c0_30 = arith.constant 0 : index
    %24 = vector.load %arg9[%c16, %c0_30] : memref<128x288xbf16, #tpu.memory_space<vmem>>, vector<4x288xbf16>
    tpu.vector_store %arg9[%c16, %c0_30], %23 {strides = array<i32>} : memref<128x288xbf16, #tpu.memory_space<vmem>>, vector<4x288xbf16>,
    %c0_31 = arith.constant 0 : index
    %c22 = arith.constant 22 : index
    %25 = vector.load %arg8[%c0_31, %c22] : memref<8x328xbf16, #tpu.memory_space<vmem>>, vector<4x288xbf16>
    %c20_32 = arith.constant 20 : index
    %c0_33 = arith.constant 0 : index
    %26 = vector.load %arg9[%c20_32, %c0_33] : memref<128x288xbf16, #tpu.memory_space<vmem>>, vector<4x288xbf16>
    tpu.vector_store %arg9[%c20_32, %c0_33], %25 {strides = array<i32>} : memref<128x288xbf16, #tpu.memory_space<vmem>>, vector<4x288xbf16>,
    %c0_34 = arith.constant 0 : index
    %c38_35 = arith.constant 38 : index
    %27 = vector.load %arg8[%c0_34, %c38_35] : memref<8x328xbf16, #tpu.memory_space<vmem>>, vector<4x288xbf16>
    %c24 = arith.constant 24 : index
    %c0_36 = arith.constant 0 : index
    %28 = vector.load %arg9[%c24, %c0_36] : memref<128x288xbf16, #tpu.memory_space<vmem>>, vector<4x288xbf16>
    tpu.vector_store %arg9[%c24, %c0_36], %27 {strides = array<i32>} : memref<128x288xbf16, #tpu.memory_space<vmem>>, vector<4x288xbf16>,
    %c0_37 = arith.constant 0 : index
    %c39 = arith.constant 39 : index
    %29 = vector.load %arg8[%c0_37, %c39] : memref<8x328xbf16, #tpu.memory_space<vmem>>, vector<4x288xbf16>
    %c28 = arith.constant 28 : index
    %c0_38 = arith.constant 0 : index
    %30 = vector.load %arg9[%c28, %c0_38] : memref<128x288xbf16, #tpu.memory_space<vmem>>, vector<4x288xbf16>
    tpu.vector_store %arg9[%c28, %c0_38], %29 {strides = array<i32>} : memref<128x288xbf16, #tpu.memory_space<vmem>>, vector<4x288xbf16>,
    %c0_39 = arith.constant 0 : index
    %c40 = arith.constant 40 : index
    %31 = vector.load %arg8[%c0_39, %c40] : memref<8x328xbf16, #tpu.memory_space<vmem>>, vector<4x288xbf16>
    %c32 = arith.constant 32 : index
    %c0_40 = arith.constant 0 : index
    %32 = vector.load %arg9[%c32, %c0_40] : memref<128x288xbf16, #tpu.memory_space<vmem>>, vector<4x288xbf16>
    tpu.vector_store %arg9[%c32, %c0_40], %31 {strides = array<i32>} : memref<128x288xbf16, #tpu.memory_space<vmem>>, vector<4x288xbf16>,
    %c0_41 = arith.constant 0 : index
    %c0_42 = arith.constant 0 : index
    %33 = vector.load %arg9[%c0_41, %c0_42] : memref<128x288xbf16, #tpu.memory_space<vmem>>, vector<128x288xbf16>
    %cst_43 = arith.constant dense<0.000000e+00> : vector<8x288xf32>
    %34 = tpu.matmul %13, %33, %cst_43 {dimension_numbers = #tpu.dot_dimension_numbers<[1], [0], [0], [1], [0, 0, 1, 1], [], []>} : vector<8x128xbf16>, vector<128x288xbf16>, vector<8x288xf32> -> vector<8x288xf32>
    %35 = vector.broadcast %14 : vector<8x1xf32> to vector<8x288xf32>
    %36 = arith.addf %34, %35 : vector<8x288xf32>
    %cst_44 = arith.constant 0.000000e+00 : f32
    %37 = vector.broadcast %cst_44 : f32 to vector<8x288xf32>
    %38 = arith.maximumf %36, %37 : vector<8x288xf32>
    %39 = arith.truncf %38 : vector<8x288xf32> to vector<8x288xbf16>
    %c0_45 = arith.constant 0 : index
    %c21_46 = arith.constant 21 : index
    %40 = vector.load %arg8[%c0_45, %c21_46] : memref<8x328xbf16, #tpu.memory_space<vmem>>, vector<8x288xbf16>
    tpu.vector_store %arg8[%c0_45, %c21_46], %39 {strides = array<i32>} : memref<8x328xbf16, #tpu.memory_space<vmem>>, vector<8x288xbf16>,
    %c0_47 = arith.constant 0 : index
    %c2_48 = arith.constant 2 : index
    %41 = vector.load %arg8[%c0_47, %c2_48] : memref<8x328xbf16, #tpu.memory_space<vmem>>, vector<8x324xbf16>
    %c0_49 = arith.constant 0 : index
    %c4_50 = arith.constant 4 : index
    %42 = vector.load %arg8[%c0_49, %c4_50] : memref<8x328xbf16, #tpu.memory_space<vmem>>, vector<8x324xbf16>
    %c0_51 = arith.constant 0 : index
    %c0_52 = arith.constant 0 : index
    %43 = vector.load %arg8[%c0_51, %c0_52] : memref<8x328xbf16, #tpu.memory_space<vmem>>, vector<8x324xbf16>
    %c0_53 = arith.constant 0 : index
    %c0_54 = arith.constant 0 : index
    %44 = vector.load %arg6[%c0_53, %c0_54] : memref<1x324xi32, #tpu.memory_space<vmem>>, vector<1x324xi32>
    %45 = vector.shape_cast %44 : vector<1x324xi32> to vector<1x324xi32>
    %46 = vector.broadcast %45 : vector<1x324xi32> to vector<8x324xi32>
    %c1_i32 = arith.constant 1 : i32
    %47 = vector.broadcast %c1_i32 : i32 to vector<8x324xi32>
    %48 = arith.cmpi eq, %46, %47 : vector<8x324xi32>
    %c2_i32 = arith.constant 2 : i32
    %49 = vector.broadcast %c2_i32 : i32 to vector<8x324xi32>
    %50 = arith.cmpi eq, %46, %49 : vector<8x324xi32>
    %51 = arith.select %50, %43, %41 : vector<8x324xi1>, vector<8x324xbf16>
    %52 = arith.select %48, %42, %51 : vector<8x324xi1>, vector<8x324xbf16>
    %c0_55 = arith.constant 0 : index
    %c2_56 = arith.constant 2 : index
    %53 = vector.load %arg8[%c0_55, %c2_56] : memref<8x328xbf16, #tpu.memory_space<vmem>>, vector<8x324xbf16>
    tpu.vector_store %arg8[%c0_55, %c2_56], %52 {strides = array<i32>} : memref<8x328xbf16, #tpu.memory_space<vmem>>, vector<8x324xbf16>,
    %c0_57 = arith.constant 0 : index
    %c38_58 = arith.constant 38 : index
    %54 = vector.load %arg8[%c0_57, %c38_58] : memref<8x328xbf16, #tpu.memory_space<vmem>>, vector<8x18xbf16>
    %c0_59 = arith.constant 0 : index
    %c2_60 = arith.constant 2 : index
    %55 = vector.load %arg8[%c0_59, %c2_60] : memref<8x328xbf16, #tpu.memory_space<vmem>>, vector<8x18xbf16>
    tpu.vector_store %arg8[%c0_59, %c2_60], %54 {strides = array<i32>} : memref<8x328xbf16, #tpu.memory_space<vmem>>, vector<8x18xbf16>,
    %c0_61 = arith.constant 0 : index
    %c272_62 = arith.constant 272 : index
    %56 = vector.load %arg8[%c0_61, %c272_62] : memref<8x328xbf16, #tpu.memory_space<vmem>>, vector<8x18xbf16>
    %c0_63 = arith.constant 0 : index
    %c308_64 = arith.constant 308 : index
    %57 = vector.load %arg8[%c0_63, %c308_64] : memref<8x328xbf16, #tpu.memory_space<vmem>>, vector<8x18xbf16>
    tpu.vector_store %arg8[%c0_63, %c308_64], %56 {strides = array<i32>} : memref<8x328xbf16, #tpu.memory_space<vmem>>, vector<8x18xbf16>,
    %c0_65 = arith.constant 0 : index
    %c0_66 = arith.constant 0 : index
    %58 = vector.load %arg4[%c0_65, %c0_66] : memref<8x128xbf16, #tpu.memory_space<vmem>>, vector<8x128xbf16>
    %c0_67 = arith.constant 0 : index
    %c0_68 = arith.constant 0 : index
    %59 = vector.load %arg5[%c0_67, %c0_68] : memref<8x1xf32, #tpu.memory_space<vmem>>, vector<8x1xf32>
    %c0_69 = arith.constant 0 : index
    %c2_70 = arith.constant 2 : index
    %60 = vector.load %arg8[%c0_69, %c2_70] : memref<8x328xbf16, #tpu.memory_space<vmem>>, vector<8x288xbf16>
    %c0_71 = arith.constant 0 : index
    %c0_72 = arith.constant 0 : index
    %61 = vector.load %arg9[%c0_71, %c0_72] : memref<128x288xbf16, #tpu.memory_space<vmem>>, vector<8x288xbf16>
    tpu.vector_store %arg9[%c0_71, %c0_72], %60 {strides = array<i32>} : memref<128x288xbf16, #tpu.memory_space<vmem>>, vector<8x288xbf16>,
    %c0_73 = arith.constant 0 : index
    %c3_74 = arith.constant 3 : index
    %62 = vector.load %arg8[%c0_73, %c3_74] : memref<8x328xbf16, #tpu.memory_space<vmem>>, vector<8x288xbf16>
    %c8_75 = arith.constant 8 : index
    %c0_76 = arith.constant 0 : index
    %63 = vector.load %arg9[%c8_75, %c0_76] : memref<128x288xbf16, #tpu.memory_space<vmem>>, vector<8x288xbf16>
    tpu.vector_store %arg9[%c8_75, %c0_76], %62 {strides = array<i32>} : memref<128x288xbf16, #tpu.memory_space<vmem>>, vector<8x288xbf16>,
    %c0_77 = arith.constant 0 : index
    %c4_78 = arith.constant 4 : index
    %64 = vector.load %arg8[%c0_77, %c4_78] : memref<8x328xbf16, #tpu.memory_space<vmem>>, vector<8x288xbf16>
    %c16_79 = arith.constant 16 : index
    %c0_80 = arith.constant 0 : index
    %65 = vector.load %arg9[%c16_79, %c0_80] : memref<128x288xbf16, #tpu.memory_space<vmem>>, vector<8x288xbf16>
    tpu.vector_store %arg9[%c16_79, %c0_80], %64 {strides = array<i32>} : memref<128x288xbf16, #tpu.memory_space<vmem>>, vector<8x288xbf16>,
    %c0_81 = arith.constant 0 : index
    %c20_82 = arith.constant 20 : index
    %66 = vector.load %arg8[%c0_81, %c20_82] : memref<8x328xbf16, #tpu.memory_space<vmem>>, vector<8x288xbf16>
    %c24_83 = arith.constant 24 : index
    %c0_84 = arith.constant 0 : index
    %67 = vector.load %arg9[%c24_83, %c0_84] : memref<128x288xbf16, #tpu.memory_space<vmem>>, vector<8x288xbf16>
    tpu.vector_store %arg9[%c24_83, %c0_84], %66 {strides = array<i32>} : memref<128x288xbf16, #tpu.memory_space<vmem>>, vector<8x288xbf16>,
    %c0_85 = arith.constant 0 : index
    %c21_86 = arith.constant 21 : index
    %68 = vector.load %arg8[%c0_85, %c21_86] : memref<8x328xbf16, #tpu.memory_space<vmem>>, vector<8x288xbf16>
    %c32_87 = arith.constant 32 : index
    %c0_88 = arith.constant 0 : index
    %69 = vector.load %arg9[%c32_87, %c0_88] : memref<128x288xbf16, #tpu.memory_space<vmem>>, vector<8x288xbf16>
    tpu.vector_store %arg9[%c32_87, %c0_88], %68 {strides = array<i32>} : memref<128x288xbf16, #tpu.memory_space<vmem>>, vector<8x288xbf16>,
    %c0_89 = arith.constant 0 : index
    %c22_90 = arith.constant 22 : index
    %70 = vector.load %arg8[%c0_89, %c22_90] : memref<8x328xbf16, #tpu.memory_space<vmem>>, vector<8x288xbf16>
    %c40_91 = arith.constant 40 : index
    %c0_92 = arith.constant 0 : index
    %71 = vector.load %arg9[%c40_91, %c0_92] : memref<128x288xbf16, #tpu.memory_space<vmem>>, vector<8x288xbf16>
    tpu.vector_store %arg9[%c40_91, %c0_92], %70 {strides = array<i32>} : memref<128x288xbf16, #tpu.memory_space<vmem>>, vector<8x288xbf16>,
    %c0_93 = arith.constant 0 : index
    %c38_94 = arith.constant 38 : index
    %72 = vector.load %arg8[%c0_93, %c38_94] : memref<8x328xbf16, #tpu.memory_space<vmem>>, vector<8x288xbf16>
    %c48 = arith.constant 48 : index
    %c0_95 = arith.constant 0 : index
    %73 = vector.load %arg9[%c48, %c0_95] : memref<128x288xbf16, #tpu.memory_space<vmem>>, vector<8x288xbf16>
    tpu.vector_store %arg9[%c48, %c0_95], %72 {strides = array<i32>} : memref<128x288xbf16, #tpu.memory_space<vmem>>, vector<8x288xbf16>,
    %c0_96 = arith.constant 0 : index
    %c39_97 = arith.constant 39 : index
    %74 = vector.load %arg8[%c0_96, %c39_97] : memref<8x328xbf16, #tpu.memory_space<vmem>>, vector<8x288xbf16>
    %c56 = arith.constant 56 : index
    %c0_98 = arith.constant 0 : index
    %75 = vector.load %arg9[%c56, %c0_98] : memref<128x288xbf16, #tpu.memory_space<vmem>>, vector<8x288xbf16>
    tpu.vector_store %arg9[%c56, %c0_98], %74 {strides = array<i32>} : memref<128x288xbf16, #tpu.memory_space<vmem>>, vector<8x288xbf16>,
    %c0_99 = arith.constant 0 : index
    %c40_100 = arith.constant 40 : index
    %76 = vector.load %arg8[%c0_99, %c40_100] : memref<8x328xbf16, #tpu.memory_space<vmem>>, vector<8x288xbf16>
    %c64 = arith.constant 64 : index
    %c0_101 = arith.constant 0 : index
    %77 = vector.load %arg9[%c64, %c0_101] : memref<128x288xbf16, #tpu.memory_space<vmem>>, vector<8x288xbf16>
    tpu.vector_store %arg9[%c64, %c0_101], %76 {strides = array<i32>} : memref<128x288xbf16, #tpu.memory_space<vmem>>, vector<8x288xbf16>,
    %c0_102 = arith.constant 0 : index
    %c0_103 = arith.constant 0 : index
    %78 = vector.load %arg9[%c0_102, %c0_103] : memref<128x288xbf16, #tpu.memory_space<vmem>>, vector<128x288xbf16>
    %cst_104 = arith.constant dense<0.000000e+00> : vector<8x288xf32>
    %79 = tpu.matmul %58, %78, %cst_104 {dimension_numbers = #tpu.dot_dimension_numbers<[1], [0], [0], [1], [0, 0, 1, 1], [], []>} : vector<8x128xbf16>, vector<128x288xbf16>, vector<8x288xf32> -> vector<8x288xf32>
    %80 = vector.broadcast %59 : vector<8x1xf32> to vector<8x288xf32>
    %81 = arith.addf %79, %80 : vector<8x288xf32>
    %cst_105 = arith.constant 0.000000e+00 : f32
    %82 = vector.broadcast %cst_105 : f32 to vector<8x288xf32>
    %83 = arith.maximumf %81, %82 : vector<8x288xf32>
    %c0_106 = arith.constant 0 : index
    %c0_107 = arith.constant 0 : index
    %c0_108 = arith.constant 0 : index
    %84 = vector.load %arg7[%c0_106, %c0_107, %c0_108] : memref<1x8x288xf32, #tpu.memory_space<vmem>>, vector<1x8x288xf32>
    %85 = vector.shape_cast %84 : vector<1x8x288xf32> to vector<8x288xf32>
    %86 = vector.shape_cast %83 : vector<8x288xf32> to vector<1x8x288xf32>
    tpu.vector_store %arg7[%c0_106, %c0_107, %c0_108], %86 {strides = array<i32>} : memref<1x8x288xf32, #tpu.memory_space<vmem>>, vector<1x8x288xf32>,
    return
  }
  func.func @transform_0(%arg0: i32) -> (i32, i32, i32) {
    %c0_i32 = arith.constant 0 : i32
    %c0_i32_0 = arith.constant 0 : i32
    %c0_i32_1 = arith.constant 0 : i32
    return %arg0, %c0_i32, %c0_i32_0 : i32, i32, i32
  }
  func.func @transform_1(%arg0: i32) -> (i32, i32) {
    %c0_i32 = arith.constant 0 : i32
    %c0_i32_0 = arith.constant 0 : i32
    %c0_i32_1 = arith.constant 0 : i32
    return %c0_i32, %c0_i32_0 : i32, i32
  }
  func.func @transform_2(%arg0: i32) -> (i32, i32) {
    %c0_i32 = arith.constant 0 : i32
    %c0_i32_0 = arith.constant 0 : i32
    %c0_i32_1 = arith.constant 0 : i32
    return %c0_i32, %c0_i32_0 : i32, i32
  }
  func.func @transform_3(%arg0: i32) -> (i32, i32) {
    %c0_i32 = arith.constant 0 : i32
    %c0_i32_0 = arith.constant 0 : i32
    %c0_i32_1 = arith.constant 0 : i32
    return %c0_i32, %c0_i32_0 : i32, i32
  }
  func.func @transform_4(%arg0: i32) -> (i32, i32) {
    %c0_i32 = arith.constant 0 : i32
    %c0_i32_0 = arith.constant 0 : i32
    %c0_i32_1 = arith.constant 0 : i32
    return %c0_i32, %c0_i32_0 : i32, i32
  }
  func.func @transform_5(%arg0: i32) -> (i32, i32) {
    %c0_i32 = arith.constant 0 : i32
    %c0_i32_0 = arith.constant 0 : i32
    %c0_i32_1 = arith.constant 0 : i32
    return %c0_i32, %c0_i32_0 : i32, i32
  }
  func.func @transform_6(%arg0: i32) -> (i32, i32, i32) {
    %c0_i32 = arith.constant 0 : i32
    %c0_i32_0 = arith.constant 0 : i32
    %c0_i32_1 = arith.constant 0 : i32
    return %arg0, %c0_i32, %c0_i32_0 : i32, i32, i32
  }
}

</mosaic_0001>

<bundles_post_ra>
// kernel: standard_unit.1
= control target key start
LH: loop header
LB: loop body
LE: loop exit
PB: predicated region body
PF: predicated region fallthrough
CT: control target
= control target key end

     0   :  { %s1559_s21 = smov 0   ;;  %s1766_s0 = inlined_call_operand.vmem [shape: bf16[2,4,288], index: 0, kind: input, shape index: {}]   ;;  %s1767_s1 = inlined_call_operand.vmem [shape: bf16[8,128], index: 1, kind: input, shape index: {}]   ;;  %s1768_s2 = inlined_call_operand.vmem [shape: f32[8,1], index: 2, kind: input, shape index: {}]   ;;  %s1769_s3 = inlined_call_operand.vmem [shape: bf16[8,128], index: 3, kind: input, shape index: {}]   ;;  %s1770_s4 = inlined_call_operand.vmem [shape: f32[8,1], index: 4, kind: input, shape index: {}]   ;;  %s1771_s5 = inlined_call_operand.vmem [shape: s32[1,324], index: 5, kind: input, shape index: {}]   ;;  %s1772_s6 = inlined_call_operand.vmem [shape: f32[2,8,288], index: 6, kind: output, shape index: {}]  }
   0x1 LB: > { %s1224_s22 = sadd.s32 4294967295, %s1507_s21   ;;  %p1228_p0 = scmp.ge.s32.totalorder %s1507_s21, 1  ;;  %s1507_s21 = sphi %s1559_s21, %s16_s21  }
   0x2   : > { %p212_p1 = scmp.lt.s32.totalorder %s1507_s21, 3 }
   0x4   : > { %p213_p2 = pnand %p1228_p0, %p212_p1 }
   0x5   : > { %p242_p3 = scmp.lt.s32.totalorder (!%p213_p2), %s1224_s22, 1  ;;  %s1510_s27 = smov (!%p213_p2), 20  }
   0x6   : > { %216 = sbr.rel (%p213_p2) target bundleno = 1452 (0x5ac), region = 44  ;;  %s1511_s28 = smov (!%p213_p2), 92  }
   0x7   : > { %s1512_s29 = smov (!%p213_p2), 36   ;;  %s1513_s30 = smov (!%p213_p2), 88  }
   0x8   : > { %s1514_s7 = smov (!%p213_p2), 107   ;;  %s1515_s8 = smov (!%p213_p2), 126  }
   0x9   : > { %s1516_s9 = smov (!%p213_p2), 90   ;;  %s1517_s10 = smov (!%p213_p2), 124  }
   0xa   : > { %s1518_s11 = smov (!%p213_p2), 89   ;;  %s1519_s12 = smov (!%p213_p2), 106  }
   0xb   : > { %vm281_vm0 = vcmask 11264   ;;  %v1509_v0 = vmov 0   ;;  %s1782_s22 = smov (!%p242_p3, %s1224_s22), 1  ;;  %vm283_vm1 = vcmask 585264   ;;  %vm302_vm2 = vcmask 1041568   ;;  %s1520_s13 = smov 125  }
   0xc   : > { %282 = vst.msk [vmem:[#allocation2] sm:$0xf] %vm281_vm0, %v1509_v0  ;;  %1498 = vset.pattern.permute.xlu1 %v1509_v0  ;;  %1499 = vset.pattern.permute.xlu2 %v1509_v0  ;;  %s1473_s23 = smul.u32 6, %s1782_s22  ;;  %vm303_vm3 = vcmask 1045508   ;;  %vm297_vm4 = vcmask 162816   ;;  %vm306_vm6 = vcmask 418816  }
   0xd   : > { %255 = vst [vmem:[#allocation3 + $0x30] sm:$0xcc] %v1509_v0  ;;  %1500 = vset.pattern.permute.xlu0 %v1509_v0  ;;  %vm304_vm5 = vmor %vm303_vm3, %vm302_vm2  ;;  %vm313_vm7 = vcmask 156688   ;;  %vm320_vm8 = vcmask 566688   ;;  %vm259_vm9 = vcmask 257024   ;;  %s1521_s14 = smov 108  }
   0xe   : > { %258 = vst [vmem:[#allocation3 + $0x3c] sm:$0xff] %v1509_v0  ;;  %s246_s26 = scalar_lea.vmem %s1766_s0, %s1473_s23  ;;  %vm256_vm10 = vcmask 257026   ;;  %vm341_vm11 = vcmask 254976   ;;  %vm334_vm12 = vcmask 1043456   ;;  %vm481_vm13 = vcmask 719872   ;;  %s1522_s19 = smov 21  }
   0xf   : > { %261 = vst [vmem:[#allocation3 + $0x48] sm:$0xff] %v1509_v0  ;;  %v285_v1 = vld [vmem:[%s246_s26] sm:$0x3f]  ;;  %vm409_vm14 = vcmask 875520   ;;  %vm336_vm15 = vcmask 1031168   ;;  %vm445_vm0 = vcmask 736256  }
  0x10   : > { %263 = vst [vmem:[#allocation3 + $0x54] sm:$0xff] %v1509_v0  ;;  %vm1773_vm2 = vcmask 1022976   ;;  %vm1776_vm3 = vcmask 728064   ;;  %s1523_s24 = smov 4  }
  0x11   : > { %265 = vst [vmem:[#allocation3 + $0x60] sm:$0xff] %v1509_v0 }
  0x12   : > { %267 = vst [vmem:[#allocation3 + $0x6c] sm:$0xff] %v1509_v0 }
  0x13   : > { %287 = vst [vmem:[#allocation1] ss:$2 sm:$0xff] %v285_v1 }
  0x14   : > { %269 = vst [vmem:[#allocation3 + $0x78] sm:$0xff] %v1509_v0 }
  0x15   : > { %271 = vst [vmem:[#allocation3 + $0x84] sm:$0xff] %v1509_v0 }
  0x16   : > { %273 = vst [vmem:[#allocation3 + $0x90] sm:$0xff] %v1509_v0 }
  0x17   : > { %275 = vst [vmem:[#allocation3 + $0x9c] sm:$0xff] %v1509_v0 }
  0x18   : > { %277 = vst [vmem:[#allocation3 + $0xa8] sm:$0xff] %v1509_v0 }
  0x19   : > { %279 = vst [vmem:[#allocation3 + $0xb4] sm:$0xff] %v1509_v0 }
  0x1a   : > { %v288_v2 = vld.sshfl [vmem:[#allocation1] sm:$0xff pattern:$0x75643120]  ;;  %v290_v3 = vld.sshfl [vmem:[#allocation1 + $0x8] sm:$0xff pattern:$0x75643120] }
  0x1b   : > { %292 = vrot.lane.b32.xlu0 %v288_v2, %s1510_s27  ;;  %284 = vst.msk [vmem:[#allocation2 + $0x8] sm:$0xf] %vm283_vm1, %v1509_v0  ;;  %v1293_v60 = vld [vmem:[#allocation3 + $0x78] sm:$0xf]  ;;  %v1440_v62 = vld [vmem:[#allocation3 + $0x7c] sm:$0xf] }
  0x1c   : > { %278 = vst.msk [vmem:[#allocation3 + $0xb0] sm:$0xf] %vm259_vm9, %v1509_v0  ;;  %v1441_v61 = vld [vmem:[#allocation3 + $0x80] sm:$0xf0]  ;;  %v1295_v1 = vld [vmem:[#allocation3 + $0x84] sm:$0xf0] }
  0x1d   : > { %280 = vst.msk [vmem:[#allocation3 + $0xbc] sm:$0xf] %vm259_vm9, %v1509_v0  ;;  %v1305_v51 = vld [vmem:[#allocation3 + $0x90] sm:$0xf]  ;;  %v1443_v53 = vld [vmem:[#allocation3 + $0x94] sm:$0xf]  ;;  %v1294_v63 = vor.u32 %v1441_v61, %v1293_v60 }
  0x1e   : > { %260 = vst.msk [vmem:[#allocation3 + $0x44] sm:$0xf] %vm259_vm9, %v1509_v0  ;;  %v1444_v52 = vld [vmem:[#allocation3 + $0x98] sm:$0xf0]  ;;  %v1307_v55 = vld [vmem:[#allocation3 + $0x9c] sm:$0xf0] }
  0x1f   : > { %262 = vst.msk [vmem:[#allocation3 + $0x50] sm:$0xf] %vm259_vm9, %v1509_v0  ;;  %v1317_v42 = vld [vmem:[#allocation3 + $0xa8] sm:$0xf]  ;;  %v1446_v44 = vld [vmem:[#allocation3 + $0xac] sm:$0xf]  ;;  %v1306_v54 = vor.u32 %v1444_v52, %v1305_v51  ;;  %v1310_v58 = vor.u32 %v1443_v53, %v1307_v55 }
  0x20   : > { %264 = vst.msk [vmem:[#allocation3 + $0x5c] sm:$0xf] %vm259_vm9, %v1509_v0  ;;  %v1447_v43 = vld [vmem:[#allocation3 + $0xb0] sm:$0xf0]  ;;  %v1319_v46 = vld [vmem:[#allocation3 + $0xb4] sm:$0xf0] }
  0x21   : > { %266 = vst.msk [vmem:[#allocation3 + $0x68] sm:$0xf] %vm259_vm9, %v1509_v0  ;;  %v1318_v45 = vor.u32 %v1447_v43, %v1317_v42  ;;  %v1322_v49 = vor.u32 %v1446_v44, %v1319_v46  ;;  %vm1775_vm1 = vcmask 867328   ;;  %v323_v61 = vld [vmem:[%s1768_s2] sm:$0xff] }
  0x22   : > { %268 = vst.msk [vmem:[#allocation3 + $0x74] sm:$0xf] %vm259_vm9, %v1509_v0 }
  0x23   : > { %294 = vrot.lane.b32.xlu0 %v290_v3, %s1510_s27  ;;  %v1325_v26 = vld [vmem:[#allocation3 + $0xb0] sm:$0xf]  ;;  %270 = vst.msk [vmem:[#allocation3 + $0x80] sm:$0xf] %vm259_vm9, %v1509_v0  ;;  %652 = vmatpush.bf16.msra.mxu0 %v1318_v45 }
  0x24   : > { %v1448_v27 = vld [vmem:[#allocation3 + $0xb8] sm:$0xf0]  ;;  %272 = vst.msk [vmem:[#allocation3 + $0x8c] sm:$0xf] %vm259_vm9, %v1509_v0  ;;  %665 = vmatpush.bf16.msra.mxu1 %v1322_v49 }
  0x25   : > { %v1326_v28 = vor.u32 %v1448_v27, %v1325_v26  ;;  %274 = vst.msk [vmem:[#allocation3 + $0x98] sm:$0xf] %vm259_vm9, %v1509_v0  ;;  %v1433_v27 = vld [vmem:[#allocation3 + $0x40] sm:$0xf0] }
  0x26   : > { %276 = vst.msk [vmem:[#allocation3 + $0xa4] sm:$0xf] %vm259_vm9, %v1509_v0 }
  0x27   : > { %678 = vmatpush.bf16.msra.mxu2 %v1326_v28  ;;  %653 = vmatpush.bf16.msra.mxu0 %v1306_v54  ;;  %257 = vst.msk [vmem:[#allocation3 + $0x38] sm:$0xc] %vm256_vm10, %v1509_v0 }
  0x28   : > { %666 = vmatpush.bf16.msra.mxu1 %v1310_v58  ;;  %v1289_v2 = vld [vmem:[#allocation3 + $0x68] sm:$0xf] }
  0x29   : > { %v1439_v3 = vld [vmem:[#allocation3 + $0x70] sm:$0xf0] }
  0x2a   : > { %v1301_v56 = vld [vmem:[#allocation3 + $0x80] sm:$0xf] }
  0x2b   : > { %v1442_v57 = vld [vmem:[#allocation3 + $0x88] sm:$0xf0]  ;;  %654 = vmatpush.bf16.msra.mxu0 %v1294_v63 }
  0x2c   : > { %v1313_v47 = vld [vmem:[#allocation3 + $0x98] sm:$0xf]  ;;  %v1302_v59 = vor.u32 %v1442_v57, %v1301_v56 }
  0x2d   : > { %v1445_v48 = vld [vmem:[#allocation3 + $0xa0] sm:$0xf0] }
  0x2e   : > { %v1314_v50 = vor.u32 %v1445_v48, %v1313_v47 }
  0x30   : > { %679 = vmatpush.bf16.msra.mxu2 %v1314_v50 }
  0x34   : > { %680 = vmatpush.bf16.msra.mxu2 %v1302_v59 }
  0x8d   : > { %v293_v4 = vpop.permute.xlu0 %292 }
  0x8e   : > { %v296_v5 = vrot.slane %v293_v4, 4 }
  0x90   : > { %v298_v6 = vsel %vm297_vm4, %v296_v5, %v293_v4  ;;  %v1298_v4 = vor.u32 %v1440_v62, %v1295_v1 }
  0x91   : > { %305 = vst.msk [vmem:[#allocation2] sm:$0x33] %vm304_vm5, %v298_v6  ;;  %v1281_v6 = vld [vmem:[#allocation3 + $0x60] sm:$0xf]  ;;  %vm392_vm5 = vcmask 883712  }
  0x92   : > { %667 = vmatpush.bf16.msra.mxu1 %v1298_v4 }
  0x95   : > { %v295_v7 = vpop.permute.xlu0 %294 }
  0x96   : > { %v299_v8 = vsel %vm297_vm4, %v296_v5, %v295_v7  ;;  %v1290_v5 = vor.u32 %v1439_v3, %v1289_v2  ;;  %v1438_v7 = vld [vmem:[#allocation3 + $0x68] sm:$0xf0]  ;;  %vm1774_vm4 = vcmask 1014784  }
  0x97   : > { %307 = vst.msk [vmem:[#allocation2 + $0x8] sm:$0x3] %vm306_vm6, %v299_v8  ;;  %v1437_v8 = vld [vmem:[#allocation3 + $0x64] sm:$0xf]  ;;  %vm708_vm6 = vcmask 1043624  }
  0x98   : > { %v308_v9 = vld [vmem:[#allocation2] sm:$0x3]  ;;  %681 = vmatpush.bf16.msra.mxu2 %v1290_v5 }
  0x99   : > { %310 = vrot.lane.b32.xlu1 %v308_v9, %s1511_s28  ;;  %v1282_v9 = vor.u32 %v1438_v7, %v1281_v6 }
  0x9b   : > { %655 = vmatpush.bf16.msra.mxu0 %v1282_v9 }
  0x9e   : > { %v315_v10 = vld [vmem:[#allocation2 + $0x8] sm:$0x3] }
  0xa1   : > { %317 = vrot.lane.b32.xlu1 %v315_v10, %s1512_s29  ;;  %v1283_v10 = vld [vmem:[#allocation3 + $0x6c] sm:$0xf0] }
 0x10b   : > { %v311_v11 = vpop.permute.xlu1 %310 }
 0x10c   : > { %314 = vst.msk [vmem:[#allocation2] sm:$0x3] %vm313_vm7, %v311_v11  ;;  %v1277_v11 = vld [vmem:[#allocation3 + $0x50] sm:$0xf]  ;;  %vm709_vm7 = vcmask 1047556  }
 0x113   : > { %v318_v12 = vpop.permute.xlu1 %317  ;;  %v470_v13 = vld [vmem:[#allocation2] sm:$0x33] }
 0x114   : > { %v398_v14 = vld [vmem:[#allocation2] sm:$0x33]  ;;  %321 = vst.msk [vmem:[#allocation2 + $0x8] sm:$0x3] %vm320_vm8, %v318_v12  ;;  %474 = vrot.lane.b32.xlu2 %v470_v13, %s1513_s30  ;;  %v1436_v12 = vld [vmem:[#allocation3 + $0x58] sm:$0xf0]  ;;  %v1286_v13 = vor.u32 %v1437_v8, %v1283_v10 }
 0x115   : > { %402 = vrot.lane.b32.xlu0 %v398_v14, %s1514_s7  ;;  %v434_v19 = vld [vmem:[#allocation2] sm:$0x33]  ;;  %v1278_v14 = vor.u32 %v1436_v12, %v1277_v11  ;;  %vm703_vm8 = vcmask 171008  }
 0x116   : > { %v362_v20 = vld [vmem:[#allocation2] sm:$0x33]  ;;  %668 = vmatpush.bf16.msra.mxu1 %v1286_v13 }
 0x117   : > { %v324_v24 = vld [vmem:[#allocation2] sm:$0x33]  ;;  %682 = vmatpush.bf16.msra.mxu2 %v1278_v14 }
 0x118   : > { %v415_v29 = vld [vmem:[#allocation2] sm:$0x33] }
 0x119   : > { %v343_v30 = vld [vmem:[#allocation2] sm:$0x33]  ;;  %v419_v32 = vrot.slane %v415_v29, 6 }
 0x11a   : > { %v451_v31 = vld [vmem:[#allocation2] sm:$0x33]  ;;  %v347_v33 = vrot.slane %v343_v30, 6 }
 0x11b   : > { %v471_v15 = vld [vmem:[#allocation2 + $0x8] sm:$0x3]  ;;  %v455_v34 = vrot.slane %v451_v31, 6  ;;  %v379_v40 = vld [vmem:[#allocation2] sm:$0x33] }
 0x11c   : > { %v399_v16 = vld [vmem:[#allocation2 + $0x8] sm:$0x3]  ;;  %476 = vrot.lane.b32.xlu2 %v471_v15, %s1513_s30  ;;  %v383_v41 = vrot.slane %v379_v40, 6  ;;  %v1269_v15 = vld [vmem:[#allocation3 + $0x48] sm:$0xf] }
 0x11d   : > { %v325_v17 = vld [vmem:[#allocation2 + $0x8] sm:$0x3]  ;;  %404 = vrot.lane.b32.xlu1 %v399_v16, %s1514_s7  ;;  %v1435_v16 = vld [vmem:[#allocation3 + $0x50] sm:$0xf0] }
 0x11e   : > { %330 = vrot.lane.b32.xlu0 %v325_v17, %s1515_s8  ;;  %v435_v18 = vld [vmem:[#allocation2 + $0x8] sm:$0x3]  ;;  %v1434_v17 = vld [vmem:[#allocation3 + $0x4c] sm:$0xf] }
 0x11f   : > { %v452_v21 = vld [vmem:[#allocation2 + $0x8] sm:$0x3] }
 0x120   : > { %v416_v22 = vld [vmem:[#allocation2 + $0x8] sm:$0x3]  ;;  %v456_v23 = vrot.slane %v452_v21, 6 }
 0x121   : > { %v420_v25 = vrot.slane %v416_v22, 6  ;;  %v344_v35 = vld [vmem:[#allocation2 + $0x8] sm:$0x3] }
 0x122   : > { %v380_v36 = vld [vmem:[#allocation2 + $0x8] sm:$0x3]  ;;  %v348_v37 = vrot.slane %v344_v35, 6 }
 0x123   : > { %v363_v38 = vld [vmem:[#allocation2 + $0x8] sm:$0x3]  ;;  %v384_v39 = vrot.slane %v380_v36, 6 }
 0x124   : > { %440 = vrot.lane.b32.xlu2 %v435_v18, %s1516_s9  ;;  %v1270_v18 = vor.u32 %v1435_v16, %v1269_v15  ;;  %v1432_v31 = vld [vmem:[#allocation3 + $0x38] sm:$0xf0] }
 0x125   : > { %438 = vrot.lane.b32.xlu1 %v434_v19, %s1516_s9  ;;  %v1271_v19 = vld [vmem:[#allocation3 + $0x54] sm:$0xf0] }
 0x126   : > { %366 = vrot.lane.b32.xlu0 %v362_v20, %s1517_s10  ;;  %v1274_v20 = vor.u32 %v1434_v17, %v1271_v19  ;;  %656 = vmatpush.bf16.msra.mxu0 %v1270_v18 }
 0x128   : > { %669 = vmatpush.bf16.msra.mxu1 %v1274_v20 }
 0x12c   : > { %328 = vrot.lane.b32.xlu2 %v324_v24, %s1515_s8 }
 0x12d   : > { %459 = vrot.lane.b32.xlu1 %v456_v23, %s1518_s11 }
 0x12e   : > { %423 = vrot.lane.b32.xlu0 %v420_v25, %s1519_s12 }
 0x134   : > { %421 = vrot.lane.b32.xlu2 %v419_v32, %s1519_s12  ;;  %v1259_v32 = vld [vmem:[#allocation3 + $0x3c] sm:$0xf0] }
 0x135   : > { %349 = vrot.lane.b32.xlu1 %v347_v33, %s1520_s13 }
 0x136   : > { %457 = vrot.lane.b32.xlu0 %v455_v34, %s1518_s11 }
 0x13c   : > { %351 = vrot.lane.b32.xlu2 %v348_v37, %s1520_s13 }
 0x13d   : > { %368 = vrot.lane.b32.xlu1 %v363_v38, %s1517_s10 }
 0x13e   : > { %387 = vrot.lane.b32.xlu0 %v384_v39, %s1521_s14 }
 0x144   : > { %385 = vrot.lane.b32.xlu2 %v383_v41, %s1521_s14 }
 0x145   : > { %521 = vperm.xlu1 %1498, %v323_v61  }
 0x16e   : > { %v475_v21 = vpop.permute.xlu2 %474 }
 0x16f   : > { %v478_v23 = vrot.slane %v475_v21, 4 }
 0x176   : > { %v477_v22 = vpop.permute.xlu2 %476 }
 0x177   : > { %v479_v24 = vrot.slane %v477_v22, 4  ;;  %486 = vst.msk [vmem:[#allocation3 + $0x38] sm:$0x3] %vm341_vm11, %v477_v22 }
 0x179   : > { %v480_v25 = vsel %vm334_vm12, %v478_v23, %v479_v24 }
 0x17a   : > { %v482_v26 = vsel %vm481_vm13, %v475_v21, %v480_v25 }
 0x17b   : > { %485 = vst [vmem:[#allocation3 + $0x30] sm:$0x33] %v482_v26 }
 0x17e   : > { %v441_v28 = vpop.permute.xlu2 %440  ;;  %v1265_v29 = vld [vmem:[#allocation3 + $0x38] sm:$0xf] }
 0x17f   : > { %450 = vst.msk [vmem:[#allocation3 + $0x2c] sm:$0x3] %vm341_vm11, %v441_v28  ;;  %v1266_v30 = vor.u32 %v1433_v27, %v1265_v29  ;;  %v443_v52 = vrot.slane %v441_v28, 4 }
 0x181   : > { %683 = vmatpush.bf16.msra.mxu2 %v1266_v30 }
 0x182   : > { %v1257_v33 = vld [vmem:[#allocation3 + $0x30] sm:$0xf]  ;;  %v1431_v34 = vld [vmem:[#allocation3 + $0x34] sm:$0xf] }
 0x183   : > { %v1258_v35 = vor.u32 %v1432_v31, %v1257_v33  ;;  %v1262_v36 = vor.u32 %v1431_v34, %v1259_v32  ;;  %v322_v34 = vld [vmem:[%s1767_s1] sm:$0xf] }
 0x185   : > { %657 = vmatpush.bf16.msra.mxu0 %v1258_v35  ;;  %670 = vmatpush.bf16.msra.mxu1 %v1262_v36 }
 0x186   : > { %v329_v37 = vpop.permute.xlu2 %328 }
 0x187   : > { %v403_v38 = vpop.permute.xlu0 %402  ;;  %v332_v44 = vrot.slane %v329_v37, 4 }
 0x188   : > { %v406_v41 = vrot.slane %v403_v38, 4 }
 0x18e   : > { %v422_v39 = vpop.permute.xlu2 %421 }
 0x18f   : > { %v405_v40 = vpop.permute.xlu1 %404  ;;  %v425_v59 = vrot.slane %v422_v39, 4 }
 0x190   : > { %v407_v42 = vrot.slane %v405_v40, 4  ;;  %414 = vst.msk [vmem:[#allocation3 + $0x20] sm:$0x3] %vm341_vm11, %v405_v40  ;;  %v331_v43 = vpop.permute.xlu0 %330 }
 0x191   : > { %v333_v45 = vrot.slane %v331_v43, 4  ;;  %342 = vst.msk [vmem:[#allocation3 + $0x8] sm:$0x3] %vm341_vm11, %v331_v43 }
 0x192   : > { %v408_v46 = vsel %vm334_vm12, %v406_v41, %v407_v42 }
 0x193   : > { %v410_v47 = vsel %vm409_vm14, %v403_v38, %v408_v46  ;;  %v335_v48 = vsel %vm334_vm12, %v332_v44, %v333_v45 }
 0x194   : > { %413 = vst [vmem:[#allocation3 + $0x18] sm:$0x33] %v410_v47  ;;  %v337_v49 = vsel %vm336_vm15, %v329_v37, %v335_v48 }
 0x195   : > { %340 = vst [vmem:[#allocation3] sm:$0x33] %v337_v49 }
 0x196   : > { %v352_v51 = vpop.permute.xlu2 %351 }
 0x197   : > { %v439_v50 = vpop.permute.xlu1 %438  ;;  %361 = vst.msk [vmem:[#allocation3 + $0x8] sm:$0xc] %vm256_vm10, %v352_v51  ;;  %v354_v3 = vrot.slane %v352_v51, 4 }
 0x198   : > { %v442_v53 = vrot.slane %v439_v50, 4  ;;  %v367_v54 = vpop.permute.xlu0 %366 }
 0x199   : > { %v370_v16 = vrot.slane %v367_v54, 4 }
 0x19a   : > { %v444_v55 = vsel %vm334_vm12, %v442_v53, %v443_v52 }
 0x19b   : > { %v446_v56 = vsel %vm445_vm0, %v439_v50, %v444_v55 }
 0x19c   : > { %449 = vst [vmem:[#allocation3 + $0x24] sm:$0x33] %v446_v56 }
 0x19e   : > { %v386_v14 = vpop.permute.xlu2 %385  ;;  %v1241_v31 = vld [vmem:[#allocation3 + $0x8] sm:$0xf] }
 0x19f   : > { %v460_v57 = vpop.permute.xlu1 %459  ;;  %v389_v19 = vrot.slane %v386_v14, 4 }
 0x1a0   : > { %469 = vst.msk [vmem:[#allocation3 + $0x2c] sm:$0xc] %vm256_vm10, %v460_v57  ;;  %v424_v58 = vpop.permute.xlu0 %423  ;;  %v462_v7 = vrot.slane %v460_v57, 4 }
 0x1a1   : > { %v426_v60 = vrot.slane %v424_v58, 4  ;;  %433 = vst.msk [vmem:[#allocation3 + $0x20] sm:$0xc] %vm256_vm10, %v424_v58 }
 0x1a3   : > { %v427_v62 = vsel %vm334_vm12, %v425_v59, %v426_v60  ;;  %v716_v59 = vld [vmem:[%s1771_s5] sm:$0x7] }
 0x1a4   : > { %v429_v63 = vsel %vm1775_vm1, %v422_v39, %v427_v62  ;;  %v717_v60 = vperm.slane %v716_v59, 0  ;;  %v718_v61 = vperm.slane %v716_v59, 1  ;;  %v719_v62 = vperm.slane %v716_v59, 2  ;;  %v1409_v59 = vld [vmem:[#allocation3 + $0x98] sm:$0xf] }
 0x1a5   : > { %432 = vst [vmem:[#allocation3 + $0x18] sm:$0xcc] %v429_v63 }
 0x1a6   : > { %vm722_vm1 = vcmp.eq.s32.totalorder %v719_v62, 1 }
 0x1a7   : > { %v350_v1 = vpop.permute.xlu1 %349  ;;  %v1430_v2 = vld [vmem:[#allocation3 + $0x28] sm:$0xf0] }
 0x1a8   : > { %v353_v4 = vrot.slane %v350_v1, 4  ;;  %v458_v5 = vpop.permute.xlu0 %457  ;;  %v1253_v6 = vld [vmem:[#allocation3 + $0x20] sm:$0xf] }
 0x1a9   : > { %v461_v8 = vrot.slane %v458_v5, 4  ;;  %v1254_v9 = vor.u32 %v1430_v2, %v1253_v6 }
 0x1aa   : > { %v355_v10 = vsel %vm334_vm12, %v353_v4, %v354_v3 }
 0x1ab   : > { %v357_v11 = vsel %vm1773_vm2, %v350_v1, %v355_v10  ;;  %v463_v12 = vsel %vm334_vm12, %v461_v8, %v462_v7  ;;  %684 = vmatpush.bf16.msra.mxu2 %v1254_v9  ;;  %vm721_vm2 = vcmp.eq.s32.totalorder %v718_v61, 1 }
 0x1ac   : > { %360 = vst [vmem:[#allocation3] sm:$0xcc] %v357_v11  ;;  %v465_v13 = vsel %vm1776_vm3, %v458_v5, %v463_v12  ;;  %v1245_v24 = vld [vmem:[#allocation3 + $0x18] sm:$0xf]  ;;  %v1428_v25 = vld [vmem:[#allocation3 + $0x1c] sm:$0xf] }
 0x1ad   : > { %468 = vst [vmem:[#allocation3 + $0x24] sm:$0xcc] %v465_v13  ;;  %vm724_vm3 = vcmp.eq.s32.totalorder %v718_v61, 2 }
 0x1af   : > { %v369_v15 = vpop.permute.xlu1 %368 }
 0x1b0   : > { %v371_v17 = vrot.slane %v369_v15, 4  ;;  %378 = vst.msk [vmem:[#allocation3 + $0x14] sm:$0x3] %vm341_vm11, %v369_v15  ;;  %v388_v18 = vpop.permute.xlu0 %387  ;;  %vm720_vm11 = vcmp.eq.s32.totalorder %v717_v60, 1 }
 0x1b1   : > { %v390_v20 = vrot.slane %v388_v18, 4  ;;  %397 = vst.msk [vmem:[#allocation3 + $0x14] sm:$0xc] %vm256_vm10, %v388_v18  ;;  %vm710_vm10 = vmor %vm709_vm7, %vm708_vm6  ;;  %v757_v18 = vunpack.c.h.b16 %v1509_v0 }
 0x1b2   : > { %v372_v21 = vsel %vm334_vm12, %v370_v16, %v371_v17  ;;  %vm743_vm6 = vmpackc.low %vm722_vm1, %vm722_vm1  ;;  %v756_v17 = vunpack.c.l.b16 %v1509_v0 }
 0x1b3   : > { %v374_v22 = vsel %vm1774_vm4, %v367_v54, %v372_v21  ;;  %v391_v23 = vsel %vm334_vm12, %v389_v19, %v390_v20  ;;  %v1233_v35 = vld [vmem:[#allocation3] sm:$0xf]  ;;  %v1425_v37 = vld [vmem:[#allocation3 + $0x4] sm:$0xf]  ;;  %vm742_vm4 = vmpackc.low %vm721_vm2, %vm720_vm11  ;;  %v745_v2 = vsel %vm743_vm6, 65537, %v1509_v0  ;;  %vm725_vm2 = vcmp.eq.s32.totalorder %v719_v62, 2 }
 0x1b4   : > { %377 = vst [vmem:[#allocation3 + $0xc] sm:$0x33] %v374_v22  ;;  %v393_v26 = vsel %vm392_vm5, %v386_v14, %v391_v23  ;;  %v1429_v27 = vld [vmem:[#allocation3 + $0x20] sm:$0xf0]  ;;  %v1247_v28 = vld [vmem:[#allocation3 + $0x24] sm:$0xf0] }
 0x1b5   : > { %396 = vst [vmem:[#allocation3 + $0xc] sm:$0xcc] %v393_v26  ;;  %v1246_v29 = vor.u32 %v1429_v27, %v1245_v24  ;;  %v1250_v30 = vor.u32 %v1428_v25, %v1247_v28  ;;  %v744_v63 = vsel %vm742_vm4, 65537, %v1509_v0  ;;  %vm727_vm4 = vmpackc.low %vm725_vm2, %vm725_vm2  ;;  %vm723_vm11 = vcmp.eq.s32.totalorder %v717_v60, 2  ;;  %v1469_v60 = vld [vmem:[#allocation3 + $0xa0] sm:$0xf0] }
 0x1b6   : > { %vm726_vm1 = vmpackc.low %vm724_vm3, %vm723_vm11  ;;  %v1410_v62 = vor.u32 %v1469_v60, %v1409_v59 }
 0x1b7   : > { %658 = vmatpush.bf16.msra.mxu0 %v1246_v29  ;;  %671 = vmatpush.bf16.msra.mxu1 %v1250_v30  ;;  %v522_v41 = vpop.permute.xlu1 %521 }
 0x1b8   : > { %v1427_v32 = vld [vmem:[#allocation3 + $0x10] sm:$0xf0] }
 0x1b9   : > { %v1242_v33 = vor.u32 %v1427_v32, %v1241_v31 }
 0x1bb   : > { %685 = vmatpush.bf16.msra.mxu2 %v1242_v33 }
 0x1bc   : > { %v1426_v36 = vld [vmem:[#allocation3 + $0x8] sm:$0xf0]  ;;  %v1235_v38 = vld [vmem:[#allocation3 + $0xc] sm:$0xf0] }
 0x1bd   : > { %v1234_v39 = vor.u32 %v1426_v36, %v1233_v35  ;;  %v1238_v40 = vor.u32 %v1425_v37, %v1235_v38 }
 0x1be   : > { %686 = vmatmul.bf16.vlgmr.msra.gmra.mxu2 %v322_v34 }
 0x1bf   : > { %659 = vmatpush.bf16.msra.mxu0 %v1234_v39  ;;  %672 = vmatpush.bf16.msra.mxu1 %v1238_v40 }
 0x1c2   : > { %660 = vmatmul.bf16.vlgmr.msra.gmra.mxu0 %v322_v34  ;;  %673 = vmatmul.bf16.vlgmr.msra.gmra.mxu1 %v322_v34 }
 0x23f   : > { %v661_v42 = vpop.f32.mrf.mxu0  ;;  %v674_v43 = vpop.f32.mrf.mxu1 }
 0x240   : > { %v662_v44 = vadd.f32 %v661_v42, %v522_v41  ;;  %v675_v45 = vadd.f32 %v674_v43, %v522_v41 }
 0x241   : > { %v687_v46 = vpop.f32.mrf.mxu2 }
 0x242   : > { %v691_v47 = vmax.f32 %v662_v44, 0.0  ;;  %v692_v48 = vmax.f32 %v675_v45, 0.0  ;;  %v688_v49 = vadd.f32 %v687_v46, %v522_v41 }
 0x244   : > { %v694_v50 = vpack.c.bf16 %v692_v48, %v691_v47  ;;  %v693_v51 = vmax.f32 %v688_v49, 0.0 }
 0x246   : > { %v695_v52 = vpack.c.bf16 %v693_v51, %v693_v51  ;;  %698 = vrot.lane.b32.xlu2 %v694_v50, %s1522_s19  ;;  %v1421_v51 = vld [vmem:[#allocation3 + $0xb0] sm:$0xf] }
 0x247   : > { %v663_v53 = vpop.f32.mrf.mxu0  ;;  %v676_v54 = vpop.f32.mrf.mxu1 }
 0x248   : > { %700 = vrot.lane.b32.xlu0 %v695_v52, %s1522_s19  ;;  %v1472_v52 = vld [vmem:[#allocation3 + $0xb8] sm:$0xf0]  ;;  %v1413_v54 = vld [vmem:[#allocation3 + $0xa8] sm:$0xf] }
 0x249   : > { %v689_v55 = vpop.f32.mrf.mxu2  ;;  %v1422_v53 = vor.u32 %v1472_v52, %v1421_v51 }
 0x24a   : > { %v1471_v55 = vld [vmem:[#allocation3 + $0xb0] sm:$0xf0] }
 0x24b   : > { %1149 = vmatpush.bf16.msrb.mxu1 %v1422_v53 }
 0x24f   : > { %1150 = vmatpush.bf16.msrb.mxu1 %v1410_v62 }
 0x250   : > { %746 = vrot.lane.b32.xlu0 %v744_v63, %s1523_s24  ;;  %v1401_v63 = vld [vmem:[#allocation3 + $0x90] sm:$0xf] }
 0x2a0   : > { %v699_v56 = vpop.permute.xlu2 %698 }
 0x2a1   : > { %v702_v57 = vrot.slane %v699_v56, 4 }
 0x2a3   : > { %v704_v58 = vsel %vm703_vm8, %v702_v57, %v699_v56  ;;  %v1470_v56 = vld [vmem:[#allocation3 + $0xac] sm:$0xf] }
 0x2a4   : > { %711 = vst.msk [vmem:[#allocation2] sm:$0xff] %vm710_vm10, %v704_v58  ;;  %vm712_vm10 = vcmask 429056   ;;  %v1415_v58 = vld [vmem:[#allocation3 + $0xb4] sm:$0xf0] }
 0x2a5   : > { %v1418_v61 = vor.u32 %v1470_v56, %v1415_v58 }
 0x2a7   : > { %1136 = vmatpush.bf16.msrb.mxu0 %v1418_v61 }
 0x2ab   : > { %v714_v1 = vld [vmem:[#allocation2] sm:$0xff] }
 0x2ac   : > { %730 = vrot.lane.b32.xlu1 %v714_v1, %s1515_s8 }
 0x2b4   : > { %748 = vrot.lane.b32.xlu1 %v745_v2, %s1523_s24  ;;  %v1467_v2 = vld [vmem:[#allocation3 + $0x94] sm:$0xf] }
 0x2ba   : > { %v701_v3 = vpop.permute.xlu0 %700 }
 0x2bb   : > { %v705_v4 = vsel %vm703_vm8, %v702_v57, %v701_v3  ;;  %vm751_vm8 = vcmask 31744   ;;  %v1414_v57 = vor.u32 %v1471_v55, %v1413_v54 }
 0x2bc   : > { %713 = vst.msk [vmem:[#allocation2 + $0x8] sm:$0xf] %vm712_vm10, %v705_v4  ;;  %v1403_v4 = vld [vmem:[#allocation3 + $0x9c] sm:$0xf0] }
 0x2bd   : > { %1123 = vmatpush.bf16.msra.mxu3 %v1414_v57 }
 0x2c2   : > { %v747_v14 = vpop.permute.xlu0 %746 }
 0x2c3   : > { %v715_v5 = vld [vmem:[#allocation2 + $0x8] sm:$0xf]  ;;  %v750_v15 = vrot.slane %v747_v14, 4 }
 0x2c4   : > { %732 = vrot.lane.b32.xlu2 %v715_v5, %s1515_s8 }
 0x2c5   : > { %v752_v16 = vsel %vm751_vm8, %v750_v15, %v747_v14 }
 0x2c6   : > { %v754_v19 = vunpack.c.l.b16 %v752_v16  ;;  %v755_v20 = vunpack.c.h.b16 %v752_v16 }
 0x2c8   : > { %vm758_vm6 = vcmp.ne.s32.totalorder %v754_v19, %v756_v17  ;;  %vm759_vm10 = vcmp.ne.s32.totalorder %v755_v20, %v757_v18 }
 0x2c9   : > { %vm760_vm3 = vmpackc.low %vm759_vm10, %vm758_vm6  ;;  %vm793_vm6 = vcmask 1043472  }
 0x2ca   : > { %vm794_vm10 = vmor %vm709_vm7, %vm793_vm6 }
 0x31e   : > { %v733_v6 = vpop.permute.xlu2 %732  ;;  %v731_v7 = vpop.permute.xlu1 %730 }
 0x31f   : > { %v735_v8 = vrot.slane %v733_v6, 4  ;;  %v734_v9 = vrot.slane %v731_v7, 4  ;;  %v741_v10 = vsel %vm727_vm4, %v715_v5, %v733_v6  ;;  %v1466_v6 = vld [vmem:[#allocation3 + $0x88] sm:$0xf0] }
 0x320   : > { %772 = vrot.lane.b32.xlu0 %v741_v10, %s1523_s24  ;;  %v1389_v10 = vld [vmem:[#allocation3 + $0x78] sm:$0xf] }
 0x321   : > { %v736_v11 = vsel %vm334_vm12, %v734_v9, %v735_v8 }
 0x322   : > { %v737_v12 = vsel %vm336_vm15, %v731_v7, %v736_v11  ;;  %v1406_v7 = vor.u32 %v1467_v2, %v1403_v4  ;;  %v1465_v11 = vld [vmem:[#allocation3 + $0x80] sm:$0xf0] }
 0x323   : > { %v740_v13 = vsel %vm726_vm1, %v714_v1, %v737_v12  ;;  %vm796_vm1 = vcmask 568320   ;;  %v1464_v12 = vld [vmem:[#allocation3 + $0x7c] sm:$0xf]  ;;  %v1390_v14 = vor.u32 %v1465_v11, %v1389_v10 }
 0x324   : > { %770 = vrot.lane.b32.xlu2 %v740_v13, %s1523_s24  ;;  %1137 = vmatpush.bf16.msrb.mxu0 %v1406_v7  ;;  %v1391_v13 = vld [vmem:[#allocation3 + $0x84] sm:$0xf0] }
 0x326   : > { %v749_v25 = vpop.permute.xlu1 %748 }
 0x327   : > { %v753_v26 = vsel %vm751_vm8, %v750_v15, %v749_v25  ;;  %v1394_v15 = vor.u32 %v1464_v12, %v1391_v13  ;;  %v1463_v25 = vld [vmem:[#allocation3 + $0x70] sm:$0xf0] }
 0x328   : > { %v761_v27 = vunpack.c.l.b16 %v753_v26  ;;  %v762_v28 = vunpack.c.h.b16 %v753_v26 }
 0x329   : > { %1138 = vmatpush.bf16.msrb.mxu0 %v1394_v15 }
 0x32a   : > { %vm765_vm2 = vcmp.ne.s32.totalorder %v761_v27, %v756_v17  ;;  %vm766_vm4 = vcmp.ne.s32.totalorder %v762_v28, %v757_v18 }
 0x32b   : > { %vm767_vm11 = vmpackc.low %vm766_vm4, %vm765_vm2 }
 0x37e   : > { %v771_v21 = vpop.permute.xlu2 %770 }
 0x37f   : > { %v774_v22 = vrot.slane %v771_v21, 4 }
 0x381   : > { %v775_v23 = vsel %vm751_vm8, %v774_v22, %v771_v21 }
 0x382   : > { %v779_v24 = vsel %vm760_vm3, %v714_v1, %v775_v23  ;;  %vm803_vm3 = vcmask 158736   ;;  %v1468_v1 = vld [vmem:[#allocation3 + $0x98] sm:$0xf0] }
 0x383   : > { %783 = vrot.lane.b32.xlu1 %v779_v24, %s1515_s8  ;;  %v1402_v3 = vor.u32 %v1468_v1, %v1401_v63 }
 0x385   : > { %1124 = vmatpush.bf16.msra.mxu3 %v1402_v3  ;;  %v813_v3 = vld [vmem:[%s1770_s4] sm:$0xff] }
 0x389   : > { %1125 = vmatpush.bf16.msra.mxu3 %v1390_v14 }
 0x392   : > { %v773_v0 = vpop.permute.xlu0 %772 }
 0x393   : > { %v776_v29 = vsel %vm751_vm8, %v774_v22, %v773_v0  ;;  %vm810_vm8 = vcmask 568736  }
 0x394   : > { %v780_v30 = vsel %vm767_vm11, %v715_v5, %v776_v29  ;;  %v1397_v5 = vld [vmem:[#allocation3 + $0x80] sm:$0xf] }
 0x395   : > { %785 = vrot.lane.b32.xlu2 %v780_v30, %s1515_s8  ;;  %v1398_v8 = vor.u32 %v1466_v6, %v1397_v5 }
 0x397   : > { %1151 = vmatpush.bf16.msrb.mxu1 %v1398_v8 }
 0x3ef   : > { %v786_v31 = vpop.permute.xlu2 %785 }
 0x3f0   : > { %797 = vst.msk [vmem:[#allocation2 + $0x8] sm:$0xf] %vm796_vm1, %v786_v31  ;;  %v788_v33 = vrot.slane %v786_v31, 4 }
 0x3f5   : > { %v784_v32 = vpop.permute.xlu1 %783 }
 0x3f6   : > { %v787_v34 = vrot.slane %v784_v32, 4 }
 0x3f7   : > { %v805_v35 = vld [vmem:[#allocation2 + $0x8] sm:$0xf] }
 0x3f8   : > { %v789_v36 = vsel %vm334_vm12, %v787_v34, %v788_v33  ;;  %807 = vrot.lane.b32.xlu1 %v805_v35, %s1512_s29  ;;  %v1379_v33 = vld [vmem:[#allocation3 + $0x6c] sm:$0xf0]  ;;  %s1474_s29 = smul.u32 24, %s1782_s22 }
 0x3f9   : > { %v790_v37 = vsel %vm336_vm15, %v784_v32, %v789_v36  ;;  %v1462_v32 = vld [vmem:[#allocation3 + $0x68] sm:$0xf0] }
 0x3fa   : > { %795 = vst.msk [vmem:[#allocation2] sm:$0xff] %vm794_vm10, %v790_v37 }
 0x401   : > { %v798_v38 = vld [vmem:[#allocation2] sm:$0xf] }
 0x402   : > { %800 = vrot.lane.b32.xlu0 %v798_v38, %s1511_s28 }
 0x46a   : > { %v808_v39 = vpop.permute.xlu1 %807 }
 0x46b   : > { %811 = vst.msk [vmem:[#allocation2 + $0x8] sm:$0xf] %vm810_vm8, %v808_v39 }
 0x472   : > { %v943_v40 = vld [vmem:[#allocation2 + $0x8] sm:$0xf] }
 0x473   : > { %v927_v41 = vld [vmem:[#allocation2 + $0x8] sm:$0xf]  ;;  %948 = vrot.lane.b32.xlu0 %v943_v40, %s1513_s30 }
 0x474   : > { %v911_v42 = vld [vmem:[#allocation2 + $0x8] sm:$0xf]  ;;  %932 = vrot.lane.b32.xlu1 %v927_v41, %s1518_s11  ;;  %v801_v43 = vpop.permute.xlu0 %800 }
 0x475   : > { %916 = vrot.lane.b32.xlu2 %v911_v42, %s1516_s9  ;;  %804 = vst.msk [vmem:[#allocation2] sm:$0xf] %vm803_vm3, %v801_v43  ;;  %v879_v44 = vld [vmem:[#allocation2 + $0x8] sm:$0xf] }
 0x476   : > { %v847_v45 = vld [vmem:[#allocation2 + $0x8] sm:$0xf] }
 0x477   : > { %v895_v46 = vld [vmem:[#allocation2 + $0x8] sm:$0xf] }
 0x478   : > { %v863_v48 = vld [vmem:[#allocation2 + $0x8] sm:$0xf] }
 0x479   : > { %v831_v49 = vld [vmem:[#allocation2 + $0x8] sm:$0xf] }
 0x47a   : > { %v815_v50 = vld [vmem:[#allocation2 + $0x8] sm:$0xf] }
 0x47b   : > { %884 = vrot.lane.b32.xlu0 %v879_v44, %s1514_s7 }
 0x47c   : > { %852 = vrot.lane.b32.xlu1 %v847_v45, %s1517_s10  ;;  %v942_v47 = vld [vmem:[#allocation2] sm:$0xff] }
 0x47d   : > { %900 = vrot.lane.b32.xlu2 %v895_v46, %s1519_s12 }
 0x483   : > { %868 = vrot.lane.b32.xlu0 %v863_v48, %s1521_s14 }
 0x484   : > { %914 = vrot.lane.b32.xlu1 %v942_v47, %s1516_s9 }
 0x485   : > { %946 = vrot.lane.b32.xlu2 %v942_v47, %s1513_s30 }
 0x48b   : > { %930 = vrot.lane.b32.xlu0 %v942_v47, %s1518_s11 }
 0x48c   : > { %898 = vrot.lane.b32.xlu1 %v942_v47, %s1519_s12 }
 0x48d   : > { %882 = vrot.lane.b32.xlu2 %v942_v47, %s1514_s7 }
 0x493   : > { %850 = vrot.lane.b32.xlu0 %v942_v47, %s1517_s10 }
 0x494   : > { %818 = vrot.lane.b32.xlu1 %v942_v47, %s1515_s8 }
 0x495   : > { %866 = vrot.lane.b32.xlu2 %v942_v47, %s1521_s14 }
 0x49b   : > { %834 = vrot.lane.b32.xlu0 %v942_v47, %s1520_s13 }
 0x49c   : > { %836 = vrot.lane.b32.xlu1 %v831_v49, %s1520_s13 }
 0x49d   : > { %820 = vrot.lane.b32.xlu2 %v815_v50, %s1515_s8  ;;  %s251_s8 = scalar_lea.vmem %s1772_s6, %s1474_s29 }
 0x4a5   : > { %992 = vperm.xlu2 %1499, %v813_v3  }
 0x4cf   : > { %v1710_v9 = vpop.permute.xlu2 %916 }
 0x4d0   : > { %925 = vst.msk [vmem:[#allocation3 + $0x50] sm:$0xf] %vm259_vm9, %v1710_v9  ;;  %v919_v43 = vrot.slane %v1710_v9, 4 }
 0x4d7   : > { %v1714_v16 = vpop.permute.xlu2 %900  ;;  %v1373_v41 = vld [vmem:[#allocation3 + $0x50] sm:$0xf] }
 0x4d8   : > { %909 = vst.msk [vmem:[#allocation3 + $0x44] sm:$0xf] %vm259_vm9, %v1714_v16  ;;  %v903_v57 = vrot.slane %v1714_v16, 4 }
 0x4df   : > { %v947_v17 = vpop.permute.xlu2 %946  ;;  %v1457_v47 = vld [vmem:[#allocation3 + $0x40] sm:$0xf0] }
 0x4e0   : > { %v950_v20 = vrot.slane %v947_v17, 4 }
 0x4e5   : > { %v949_v18 = vpop.permute.xlu0 %948 }
 0x4e6   : > { %v1718_v19 = vpop.permute.xlu1 %932  ;;  %v951_v21 = vrot.slane %v949_v18, 4  ;;  %957 = vst.msk [vmem:[#allocation3 + $0x68] sm:$0xf] %vm259_vm9, %v949_v18 }
 0x4e7   : > { %v883_v22 = vpop.permute.xlu2 %882  ;;  %941 = vst.msk [vmem:[#allocation3 + $0x5c] sm:$0xf] %vm259_vm9, %v1718_v19  ;;  %v935_v62 = vrot.slane %v1718_v19, 4 }
 0x4e8   : > { %v952_v23 = vsel %vm334_vm12, %v950_v20, %v951_v21  ;;  %v886_v0 = vrot.slane %v883_v22, 4 }
 0x4e9   : > { %v953_v24 = vsel %vm481_vm13, %v947_v17, %v952_v23  ;;  %vm1777_vm13 = vcmask 728064  }
 0x4ea   : > { %956 = vst [vmem:[#allocation3 + $0x60] sm:$0xff] %v953_v24 }
 0x4ed   : > { %v885_v26 = vpop.permute.xlu0 %884  ;;  %v1385_v28 = vld [vmem:[#allocation3 + $0x68] sm:$0xf] }
 0x4ee   : > { %v1725_v27 = vpop.permute.xlu1 %852  ;;  %v887_v30 = vrot.slane %v885_v26, 4  ;;  %893 = vst.msk [vmem:[#allocation3 + $0x38] sm:$0xf] %vm259_vm9, %v885_v26  ;;  %v1386_v31 = vor.u32 %v1463_v25, %v1385_v28  ;;  %v1460_v35 = vld [vmem:[#allocation3 + $0x58] sm:$0xf0] }
 0x4ef   : > { %v867_v29 = vpop.permute.xlu2 %866  ;;  %861 = vst.msk [vmem:[#allocation3 + $0x20] sm:$0xf] %vm259_vm9, %v1725_v27  ;;  %v1374_v42 = vor.u32 %v1460_v35, %v1373_v41  ;;  %v855_v10 = vrot.slane %v1725_v27, 4 }
 0x4f0   : > { %v888_v34 = vsel %vm334_vm12, %v886_v0, %v887_v30  ;;  %1152 = vmatpush.bf16.msrb.mxu1 %v1386_v31  ;;  %v870_v48 = vrot.slane %v867_v29, 4 }
 0x4f1   : > { %v889_v36 = vsel %vm409_vm14, %v883_v22, %v888_v34  ;;  %v1377_v37 = vld [vmem:[#allocation3 + $0x60] sm:$0xf]  ;;  %v1461_v38 = vld [vmem:[#allocation3 + $0x64] sm:$0xf]  ;;  %vm1778_vm14 = vcmask 867328  }
 0x4f2   : > { %892 = vst [vmem:[#allocation3 + $0x30] sm:$0xff] %v889_v36  ;;  %v1378_v39 = vor.u32 %v1462_v32, %v1377_v37  ;;  %v1382_v40 = vor.u32 %v1461_v38, %v1379_v33 }
 0x4f4   : > { %1126 = vmatpush.bf16.msra.mxu3 %v1378_v39  ;;  %1139 = vmatpush.bf16.msrb.mxu0 %v1382_v40 }
 0x4f5   : > { %1153 = vmatpush.bf16.msrb.mxu1 %v1374_v42  ;;  %v869_v44 = vpop.permute.xlu0 %868  ;;  %v1361_v46 = vld [vmem:[#allocation3 + $0x38] sm:$0xf] }
 0x4f6   : > { %v915_v45 = vpop.permute.xlu1 %914  ;;  %v871_v49 = vrot.slane %v869_v44, 4  ;;  %877 = vst.msk [vmem:[#allocation3 + $0x2c] sm:$0xf] %vm259_vm9, %v869_v44  ;;  %v1362_v52 = vor.u32 %v1457_v47, %v1361_v46  ;;  %v1349_v60 = vld [vmem:[#allocation3 + $0x20] sm:$0xf] }
 0x4f7   : > { %v918_v50 = vrot.slane %v915_v45, 4  ;;  %v821_v51 = vpop.permute.xlu2 %820 }
 0x4f8   : > { %829 = vst.msk [vmem:[#allocation3 + $0x8] sm:$0xf] %vm259_vm9, %v821_v51  ;;  %v872_v53 = vsel %vm334_vm12, %v870_v48, %v871_v49  ;;  %v823_v11 = vrot.slane %v821_v51, 4 }
 0x4f9   : > { %v920_v54 = vsel %vm334_vm12, %v918_v50, %v919_v43  ;;  %v873_v55 = vsel %vm392_vm5, %v867_v29, %v872_v53  ;;  %1154 = vmatpush.bf16.msrb.mxu1 %v1362_v52  ;;  %v1353_v28 = vld [vmem:[#allocation3 + $0x30] sm:$0xf]  ;;  %v1455_v0 = vld [vmem:[#allocation3 + $0x34] sm:$0xf] }
 0x4fa   : > { %v921_v56 = vsel %vm445_vm0, %v915_v45, %v920_v54  ;;  %876 = vst [vmem:[#allocation3 + $0x24] sm:$0xff] %v873_v55  ;;  %vm1779_vm0 = vcmask 1014784   ;;  %v812_v45 = vld [vmem:[%s1769_s3] sm:$0xf] }
 0x4fb   : > { %924 = vst [vmem:[#allocation3 + $0x48] sm:$0xff] %v921_v56 }
 0x4fd   : > { %v931_v58 = vpop.permute.xlu0 %930  ;;  %v1454_v61 = vld [vmem:[#allocation3 + $0x28] sm:$0xf0] }
 0x4fe   : > { %v899_v59 = vpop.permute.xlu1 %898  ;;  %v934_v63 = vrot.slane %v931_v58, 4  ;;  %v1350_v2 = vor.u32 %v1454_v61, %v1349_v60 }
 0x4ff   : > { %v902_v1 = vrot.slane %v899_v59, 4  ;;  %v1337_v41 = vld [vmem:[#allocation3 + $0x8] sm:$0xf]  ;;  %v993_v51 = vpop.permute.xlu2 %992 }
 0x500   : > { %v936_v4 = vsel %vm334_vm12, %v934_v63, %v935_v62  ;;  %1155 = vmatpush.bf16.msrb.mxu1 %v1350_v2 }
 0x501   : > { %v904_v5 = vsel %vm334_vm12, %v902_v1, %v903_v57  ;;  %v937_v6 = vsel %vm1777_vm13, %v931_v58, %v936_v4  ;;  %v1453_v34 = vld [vmem:[#allocation3 + $0x20] sm:$0xf0]  ;;  %v1343_v38 = vld [vmem:[#allocation3 + $0x24] sm:$0xf0] }
 0x502   : > { %v905_v7 = vsel %vm1778_vm14, %v899_v59, %v904_v5  ;;  %940 = vst [vmem:[#allocation3 + $0x54] sm:$0xff] %v937_v6  ;;  %v1365_v16 = vld [vmem:[#allocation3 + $0x48] sm:$0xf]  ;;  %v1458_v20 = vld [vmem:[#allocation3 + $0x4c] sm:$0xf] }
 0x503   : > { %908 = vst [vmem:[#allocation3 + $0x3c] sm:$0xff] %v905_v7 }
 0x505   : > { %v851_v8 = vpop.permute.xlu0 %850 }
 0x506   : > { %v819_v9 = vpop.permute.xlu1 %818  ;;  %v854_v12 = vrot.slane %v851_v8, 4 }
 0x507   : > { %v822_v13 = vrot.slane %v819_v9, 4 }
 0x508   : > { %v856_v14 = vsel %vm334_vm12, %v854_v12, %v855_v10 }
 0x509   : > { %v824_v15 = vsel %vm334_vm12, %v822_v13, %v823_v11  ;;  %v857_v17 = vsel %vm1779_vm0, %v851_v8, %v856_v14  ;;  %v1459_v19 = vld [vmem:[#allocation3 + $0x50] sm:$0xf0]  ;;  %v1367_v21 = vld [vmem:[#allocation3 + $0x54] sm:$0xf0] }
 0x50a   : > { %v825_v18 = vsel %vm336_vm15, %v819_v9, %v824_v15  ;;  %860 = vst [vmem:[#allocation3 + $0x18] sm:$0xff] %v857_v17  ;;  %v1366_v22 = vor.u32 %v1459_v19, %v1365_v16  ;;  %v1370_v23 = vor.u32 %v1458_v20, %v1367_v21  ;;  %v1456_v24 = vld [vmem:[#allocation3 + $0x38] sm:$0xf0]  ;;  %v1355_v25 = vld [vmem:[#allocation3 + $0x3c] sm:$0xf0]  ;;  %vm1780_vm15 = vcmask 1022976  }
 0x50b   : > { %828 = vst [vmem:[#allocation3] sm:$0xff] %v825_v18  ;;  %v1354_v31 = vor.u32 %v1456_v24, %v1353_v28  ;;  %v1358_v32 = vor.u32 %v1455_v0, %v1355_v25 }
 0x50c   : > { %1127 = vmatpush.bf16.msra.mxu3 %v1366_v22  ;;  %1140 = vmatpush.bf16.msrb.mxu0 %v1370_v23 }
 0x50d   : > { %v835_v26 = vpop.permute.xlu0 %834 }
 0x50e   : > { %v837_v27 = vpop.permute.xlu1 %836  ;;  %v838_v29 = vrot.slane %v835_v26, 4 }
 0x50f   : > { %v839_v30 = vrot.slane %v837_v27, 4  ;;  %845 = vst.msk [vmem:[#allocation3 + $0x14] sm:$0xf] %vm259_vm9, %v837_v27  ;;  %vm1167_vm9 = vcmask 261120  }
 0x510   : > { %1128 = vmatpush.bf16.msra.mxu3 %v1354_v31  ;;  %1141 = vmatpush.bf16.msrb.mxu0 %v1358_v32 }
 0x511   : > { %v840_v33 = vsel %vm334_vm12, %v838_v29, %v839_v30  ;;  %v1341_v36 = vld [vmem:[#allocation3 + $0x18] sm:$0xf]  ;;  %v1452_v37 = vld [vmem:[#allocation3 + $0x1c] sm:$0xf] }
 0x512   : > { %v841_v35 = vsel %vm1780_vm15, %v835_v26, %v840_v33  ;;  %v1342_v39 = vor.u32 %v1453_v34, %v1341_v36  ;;  %v1346_v40 = vor.u32 %v1452_v37, %v1343_v38  ;;  %v1329_v44 = vld [vmem:[#allocation3] sm:$0xf]  ;;  %v1449_v47 = vld [vmem:[#allocation3 + $0x4] sm:$0xf] }
 0x513   : > { %844 = vst [vmem:[#allocation3 + $0xc] sm:$0xff] %v841_v35 }
 0x514   : > { %1129 = vmatpush.bf16.msra.mxu3 %v1342_v39  ;;  %1142 = vmatpush.bf16.msrb.mxu0 %v1346_v40 }
 0x516   : > { %v1451_v42 = vld [vmem:[#allocation3 + $0x10] sm:$0xf0] }
 0x517   : > { %v1338_v43 = vor.u32 %v1451_v42, %v1337_v41 }
 0x519   : > { %1156 = vmatpush.bf16.msrb.mxu1 %v1338_v43 }
 0x51a   : > { %v1450_v46 = vld [vmem:[#allocation3 + $0x8] sm:$0xf0]  ;;  %v1331_v48 = vld [vmem:[#allocation3 + $0xc] sm:$0xf0] }
 0x51b   : > { %v1330_v49 = vor.u32 %v1450_v46, %v1329_v44  ;;  %v1334_v50 = vor.u32 %v1449_v47, %v1331_v48 }
 0x51c   : > { %1157 = vmatmul.bf16.vlgmr.msrb.gmra.mxu1 %v812_v45 }
 0x51d   : > { %1130 = vmatpush.bf16.msra.mxu3 %v1330_v49  ;;  %1143 = vmatpush.bf16.msrb.mxu0 %v1334_v50 }
 0x520   : > { %1131 = vmatmul.bf16.vlgmr.msra.gmra.mxu3 %v812_v45  ;;  %1144 = vmatmul.bf16.vlgmr.msrb.gmra.mxu0 %v812_v45 }
 0x599   : > { %v1158_v52 = vpop.f32.mrf.mxu1 }
 0x59a   : > { %v1159_v53 = vadd.f32 %v1158_v52, %v993_v51 }
 0x59c   : > { %v1164_v54 = vmax.f32 %v1159_v53, 0.0 }
 0x59d   : > { %v1145_v55 = vpop.f32.mrf.mxu0 }
 0x59e   : > { %v1146_v56 = vadd.f32 %v1145_v55, %v993_v51  ;;  %1168 = vst.msk [vmem:[%s251_s8 + $0x10] sm:$0xff] %vm1167_vm9, %v1164_v54 }
 0x5a0   : > { %v1163_v57 = vmax.f32 %v1146_v56, 0.0 }
 0x5a1   : > { %v1160_v58 = vpop.f32.mrf.mxu1 }
 0x5a2   : > { %1166 = vst [vmem:[%s251_s8 + $0x8] sm:$0xff] %v1163_v57 }
 0x5a3   : > { %v1132_v59 = vpop.f32.mrf.mxu3 }
 0x5a4   : > { %v1133_v60 = vadd.f32 %v1132_v59, %v993_v51 }
 0x5a5   : > { %v1147_v61 = vpop.f32.mrf.mxu0 }
 0x5a6   : > { %v1162_v62 = vmax.f32 %v1133_v60, 0.0 }
 0x5a8   : > { %1165 = vst [vmem:[%s251_s8] sm:$0xff] %v1162_v62 }
 0x5ab   : > { %v1134_v63 = vpop.f32.mrf.mxu3 }
 0x5ac PF: > { %s16_s21 = sadd.s32 1, %s1507_s21  }
 0x5ad   : > { %p13_p4 = scmp.ge.s32.totalorder %s16_s21, 4  }
 0x5af   :  { %15 = sbr.rel (!%p13_p4) target bundleno = 1 (0x1), region = 74 }

</bundles_post_ra>
